<compile_context>
chip_gen: v6e
topology: v6e:2x2x1
jax: 0.10.0
libtpu: 0.0.40
codegen_flags: <defaults>
</compile_context>

<pallas_src>
import functools

import numpy as np

import jax
import jax.numpy as jnp
from jax.experimental import pallas as pl
from jax.experimental.pallas import tpu as pltpu

EPS = 1e-5                       # nn.BatchNorm2d default eps
LANES = 128
VMEM_LIMIT = 48 * 1024 * 1024    # stays inside v7x's 64 MiB physical VMEM


def _round_up(v, m):
    return (v + m - 1) // m * m


# -------------------- pass 1: conv matmul (recomputed later) + streamed stats --------------------
def _stats_kernel(p_ref, wc_ref, ssum_ref, ssq_ref):
    # p_ref: (1, TM, K)  wc_ref: (K, 4*Cout)  ssum/ssq: (1, 1, 1, 4*Cout) f32 accumulators.
    # Conv bias is NOT added here; it is folded analytically into the stats in the coef
    # kernel, so zero pad rows (HW -> HW_pad) contribute exactly nothing.
    y0 = jnp.dot(p_ref[0], wc_ref[...], preferred_element_type=jnp.float32)

    @pl.when(pl.program_id(2) == 0)
    def _():
        ssum_ref[...] = jnp.zeros_like(ssum_ref)
        ssq_ref[...] = jnp.zeros_like(ssq_ref)

    ssum_ref[...] += jnp.sum(y0, axis=0, keepdims=True)[None, None]
    ssq_ref[...] += jnp.sum(y0 * y0, axis=0, keepdims=True)[None, None]


# ---------- tiny gridless kernel: BN stats + DyReLU coefs, folded into (A1,B1,A2,B2) ----------
def _coef_kernel(s1_ref, s2_ref, bc_ref, gamma_ref, beta_ref,
                 w1_ref, b1_ref, w2_ref, b2_ref, ab_ref, *, count, hw, cp):
    # s1/s2: (N, CP) per-sample sums of y0 / y0^2 (un-biased conv output, 128-lane padded)
    # bc/gamma/beta: (1, CP)   w1: (CP, HIDP)  b1: (1, HIDP)  w2: (HIDP, 4*CP)  b2: (1, 4*CP)
    # ab_ref: (4, N, CP) rows = A1, B1, A2, B2 of out = max(y0*A1 + B1, y0*A2 + B2)
    s1 = s1_ref[...]
    s2 = s2_ref[...]
    b = bc_ref[...]

    # Biased conv output y = y0 + b; fold the bias into the streamed sums analytically.
    sum_y = s1 + hw * b
    sum_y2 = s2 + 2.0 * b * s1 + hw * (b * b)

    # BatchNorm2d training-mode (biased) batch stats.
    # NOTE: E[y^2]-E[y]^2 in f32 can lose precision when |mean| >> std over very large
    # N*HW; switch to a shifted/Welford-style accumulation if that regime matters.
    mean = jnp.sum(sum_y, axis=0, keepdims=True) / count          # (1, CP)
    ex2 = jnp.sum(sum_y2, axis=0, keepdims=True) / count
    var = jnp.maximum(ex2 - mean * mean, 0.0)
    scale = gamma_ref[...] * jax.lax.rsqrt(var + EPS)
    shift = beta_ref[...] - mean * scale

    # DyReLU-B: per-sample spatial mean of the BN output.
    theta = (sum_y / hw) * scale + shift                          # (N, CP)
    h = jnp.dot(theta, w1_ref[...], preferred_element_type=jnp.float32) + b1_ref[...]
    h = jnp.maximum(h, 0.0)
    t = jnp.dot(h, w2_ref[...], preferred_element_type=jnp.float32) + b2_ref[...]
    v = jnp.tanh(0.5 * t)                                         # == 2*sigmoid(t) - 1

    a1 = v[:, 0 * cp:1 * cp] + 1.0        # lambda=1.0, init_v=1.0
    a2 = v[:, 1 * cp:2 * cp]              # lambda=1.0, init_v=0.0
    c1 = 0.5 * v[:, 2 * cp:3 * cp]        # lambda=0.5, init_v=0.0
    c2 = 0.5 * v[:, 3 * cp:4 * cp]        # lambda=0.5, init_v=0.0

    # Fold conv bias + BN affine into the DyReLU piecewise-linear coefficients.
    off = b * scale + shift
    ab_ref[0] = scale * a1
    ab_ref[1] = off * a1 + c1
    ab_ref[2] = scale * a2
    ab_ref[3] = off * a2 + c2


# -------------------- pass 2: recompute conv, apply folded BN + DyReLU max --------------------
def _apply_kernel(p_ref, wc_ref, ab_ref, o_ref):
    # p_ref: (1, TM, K)  wc_ref: (K, 4*Cout)  ab_ref: (1, 4, 4*Cout)  o_ref: (1, TM, 4*Cout)
    y0 = jnp.dot(p_ref[0], wc_ref[...], preferred_element_type=jnp.float32)
    ab = ab_ref[0]
    o = jnp.maximum(y0 * ab[0:1, :] + ab[1:2, :], y0 * ab[2:3, :] + ab[3:4, :])
    o_ref[0] = o.astype(o_ref.dtype)


# ------------------------------------------ wrapper ------------------------------------------
def up_conv_pallas(x_nchw, p, *, compute_dtype=jnp.bfloat16, row_tile=4096, out_dtype=None):
    N, Cin, H, W = x_nchw.shape
    Cout = p["conv_w"].shape[0]
    hid = p["fc1_w"].shape[0]
    HW = H * W                      # original pixels per sample
    HW_UP = 4 * HW                  # upsampled pixels per sample
    K = 9 * Cin                     # unpadded contraction dim (full-dim last axis is legal)
    C4 = 4 * Cout                   # 4 sub-pixel phases x output channels
    out_dtype = x_nchw.dtype if out_dtype is None else out_dtype   # bf16 also supported

    # --- row tiling over original pixels (VMEM-guarded; HW padded up to a tile multiple) ---
    in_it = np.dtype(compute_dtype).itemsize
    out_it = np.dtype(out_dtype).itemsize
    bytes_per_row = 2 * K * in_it + 2 * C4 * out_it + C4 * 4       # dbl-buffered in/out + acc
    cap = max(8, min(row_tile, (24 * 1024 * 1024) // bytes_per_row) // 8 * 8)
    TM = _round_up(HW, 8) if HW <= cap else cap
    HW_pad = _round_up(HW, TM)
    TPS = HW_pad // TM
    CSPLIT = 2 if TPS % 2 == 0 else 1        # v7x megacore split of the tile axis
    TPT = TPS // CSPLIT

    # --- glue: 3x3 im2col over the ORIGINAL grid (no 2x upsample, no K padding) ---
    x_pad = jnp.pad(jnp.transpose(x_nchw, (0, 2, 3, 1)), ((0, 0), (1, 1), (1, 1), (0, 0)))
    patches = jnp.stack(
        [x_pad[:, u:u + H, v:v + W, :] for u in range(3) for v in range(3)],
        axis=3).reshape(N, HW, K)
    if HW_pad > HW:
        patches = jnp.pad(patches, ((0, 0), (0, HW_pad - HW), (0, 0)))
    patches = patches.astype(compute_dtype)

    # --- glue: phase-combined conv weight (9*Cin, 4*Cout), columns = [phase(a,b) | Cout] ---
    # Nearest-2x upsample + 3x3 conv == per-phase 2x2 conv on the original image; original
    # weight W[kh,kw] lands on original-grid tap (u,v) = ((a+kh+1)//2, (b+kw+1)//2).
    cw = p["conv_w"].astype(jnp.float32)                           # (Cout, Cin, 3, 3)
    wc = jnp.zeros((3, 3, Cin, C4), jnp.float32)
    for a in (0, 1):
        for b in (0, 1):
            col = (2 * a + b) * Cout
            for kh in range(3):
                for kw in range(3):
                    u, v = (a + kh + 1) // 2, (b + kw + 1) // 2
                    wc = wc.at[u, v, :, col:col + Cout].add(cw[:, :, kh, kw].T)
    wc = wc.reshape(K, C4).astype(compute_dtype)

    # --- pass 1: streamed per-sample / per-core sum and sumsq of the un-biased conv output ---
    ssum, ssq = pl.pallas_call(
        _stats_kernel,
        grid=(N, CSPLIT, TPT),
        in_specs=[
            pl.BlockSpec((1, TM, K), lambda n, c, t: (n, c * TPT + t, 0)),
            pl.BlockSpec((K, C4), lambda n, c, t: (0, 0)),
        ],
        out_specs=[
            pl.BlockSpec((1, 1, 1, C4), lambda n, c, t: (n, c, 0, 0)),
            pl.BlockSpec((1, 1, 1, C4), lambda n, c, t: (n, c, 0, 0)),
        ],
        out_shape=[
            jax.ShapeDtypeStruct((N, CSPLIT, 1, C4), jnp.float32),
            jax.ShapeDtypeStruct((N, CSPLIT, 1, C4), jnp.float32),
        ],
        compiler_params=pltpu.CompilerParams(
            dimension_semantics=("parallel", "parallel", "arbitrary"),
            vmem_limit_bytes=VMEM_LIMIT),
    )(patches, wc)

    # --- tiny glue: fold core-split + phases, pad channels to 128 lanes for the coef kernel ---
    CP = _round_up(Cout, LANES)
    HIDP = _round_up(hid, LANES)
    s1 = jnp.pad(ssum.reshape(N, CSPLIT * 4, Cout).sum(axis=1), ((0, 0), (0, CP - Cout)))
    s2 = jnp.pad(ssq.reshape(N, CSPLIT * 4, Cout).sum(axis=1), ((0, 0), (0, CP - Cout)))
    bcp = jnp.pad(p["conv_b"], (0, CP - Cout)).reshape(1, CP).astype(jnp.float32)
    gammap = jnp.pad(p["bn_g"], (0, CP - Cout)).reshape(1, CP).astype(jnp.float32)
    betap = jnp.pad(p["bn_b"], (0, CP - Cout)).reshape(1, CP).astype(jnp.float32)
    w1p = jnp.pad(p["fc1_w"].T, ((0, CP - Cout), (0, HIDP - hid))).astype(jnp.float32)
    b1p = jnp.pad(p["fc1_b"], (0, HIDP - hid)).reshape(1, HIDP).astype(jnp.float32)
    # fc2 flat output index = channel*4 + branch -> split the 4 branches, fuse to one matmul
    w2p = jnp.concatenate(
        [jnp.pad(p["fc2_w"][j::4, :].T, ((0, HIDP - hid), (0, CP - Cout))) for j in range(4)],
        axis=1).astype(jnp.float32)                                # (HIDP, 4*CP)
    b2p = jnp.concatenate(
        [jnp.pad(p["fc2_b"][j::4], (0, CP - Cout)) for j in range(4)]
    ).reshape(1, 4 * CP).astype(jnp.float32)

    ab = pl.pallas_call(
        functools.partial(_coef_kernel, count=float(N * HW_UP), hw=float(HW_UP), cp=CP),
        in_specs=[pl.BlockSpec(memory_space=pltpu.MemorySpace.VMEM)] * 9,
        out_specs=pl.BlockSpec(memory_space=pltpu.MemorySpace.VMEM),
        out_shape=jax.ShapeDtypeStruct((4, N, CP), jnp.float32),
    )(s1, s2, bcp, gammap, betap, w1p, b1p, w2p, b2p)
    # Per-sample coefs, tiled over the 4 phase column-blocks used by pass 2: (N, 4, 4*Cout).
    ab4 = jnp.tile(jnp.transpose(ab, (1, 0, 2))[:, :, :Cout], (1, 1, 4))

    # --- pass 2: recompute conv tile, folded BN + DyReLU piecewise max, lane-dense store ---
    out_flat = pl.pallas_call(
        _apply_kernel,
        grid=(N, CSPLIT, TPT),
        in_specs=[
            pl.BlockSpec((1, TM, K), lambda n, c, t: (n, c * TPT + t, 0)),
            pl.BlockSpec((K, C4), lambda n, c, t: (0, 0)),
            pl.BlockSpec((1, 4, C4), lambda n, c, t: (n, 0, 0)),
        ],
        out_specs=pl.BlockSpec((1, TM, C4), lambda n, c, t: (n, c * TPT + t, 0)),
        out_shape=jax.ShapeDtypeStruct((N, HW_pad, C4), out_dtype),
        compiler_params=pltpu.CompilerParams(
            dimension_semantics=("parallel", "parallel", "parallel"),
            vmem_limit_bytes=VMEM_LIMIT),
    )(patches, wc, ab4)

    # --- layout tail: interleave the 4 phases back to NCHW to match the PyTorch module.
    # Only Cout (unpadded) channels were ever stored; the reshape is free, the transpose
    # is one XLA pass over the final (unpadded) output.
    out = out_flat[:, :HW, :].reshape(N, H, W, 2, 2, Cout)
    out = jnp.transpose(out, (0, 5, 1, 3, 2, 4)).reshape(N, Cout, 2 * H, 2 * W)
    return out


# ---------------- pure-JAX reference (mirrors the PyTorch forward) ----------------
def up_conv_ref(x, p):
    x_up = jnp.repeat(jnp.repeat(x, 2, axis=2), 2, axis=3)
    y = jax.lax.conv_general_dilated(
        x_up, p["conv_w"], (1, 1), ((1, 1), (1, 1)),
        dimension_numbers=("NCHW", "OIHW", "NCHW"))
    y = y + p["conv_b"][None, :, None, None]
    mean = jnp.mean(y, axis=(0, 2, 3), keepdims=True)
    var = jnp.mean((y - mean) ** 2, axis=(0, 2, 3), keepdims=True)
    y = ((y - mean) * (p["bn_g"][None, :, None, None] / jnp.sqrt(var + EPS))
         + p["bn_b"][None, :, None, None])
    # DyReLUB (conv_type='2d', k=2)
    C, k = y.shape[1], 2
    theta = jnp.mean(jnp.mean(y, axis=-1), axis=-1)            # (N, C)
    theta = theta @ p["fc1_w"].T + p["fc1_b"]
    theta = jnp.maximum(theta, 0.0)
    theta = theta @ p["fc2_w"].T + p["fc2_b"]
    theta = 2.0 * jax.nn.sigmoid(theta) - 1.0
    lambdas = jnp.array([1.0, 1.0, 0.5, 0.5], jnp.float32)
    init_v = jnp.array([1.0, 0.0, 0.0, 0.0], jnp.float32)
    coefs = theta.reshape(-1, C, 2 * k) * lambdas + init_v      # (N, C, 4)
    x_perm = jnp.transpose(y, (2, 3, 0, 1))[..., None]          # (H, W, N, C, 1)
    out = x_perm * coefs[:, :, :k] + coefs[:, :, k:]            # (H, W, N, C, 2)
    res = jnp.max(out, axis=-1)
    return jnp.transpose(res, (2, 3, 0, 1))


if __name__ == "__main__":
    N, Cin, Cout, H, W = 2, 4, 8, 16, 16
    red, k = 4, 2
    hid = Cout // red

    key = jax.random.PRNGKey(0)
    ks = jax.random.split(key, 9)
    params = {
        "conv_w": 0.2 * jax.random.normal(ks[0], (Cout, Cin, 3, 3), jnp.float32),
        "conv_b": 0.1 * jax.random.normal(ks[1], (Cout,), jnp.float32),
        "bn_g":   1.0 + 0.1 * jax.random.normal(ks[2], (Cout,), jnp.float32),
        "bn_b":   0.1 * jax.random.normal(ks[3], (Cout,), jnp.float32),
        "fc1_w":  0.3 * jax.random.normal(ks[4], (hid, Cout), jnp.float32),
        "fc1_b":  0.1 * jax.random.normal(ks[5], (hid,), jnp.float32),
        "fc2_w":  0.3 * jax.random.normal(ks[6], (2 * k * Cout, hid), jnp.float32),
        "fc2_b":  0.1 * jax.random.normal(ks[7], (2 * k * Cout,), jnp.float32),
    }
    x = jax.random.normal(ks[8], (N, Cin, H, W), jnp.float32)   # PyTorch NCHW input

    ref = jax.block_until_ready(up_conv_ref(x, params))

    # exact-math check: f32 matmul path (same algorithm, tight tolerance)
    f32_fn = jax.jit(functools.partial(up_conv_pallas, compute_dtype=jnp.float32))
    out32 = jax.block_until_ready(f32_fn(x, params))
    assert out32.shape == (N, Cout, 2 * H, 2 * W), out32.shape
    assert jnp.allclose(out32, ref, atol=5e-4, rtol=5e-4), float(jnp.max(jnp.abs(out32 - ref)))

    # default fast path: bf16 MXU inputs, f32 accumulation (looser tolerance)
    bf16_fn = jax.jit(functools.partial(up_conv_pallas, compute_dtype=jnp.bfloat16))
    out16 = jax.block_until_ready(bf16_fn(x, params))
    assert out16.shape == (N, Cout, 2 * H, 2 * W), out16.shape
    assert jnp.allclose(out16, ref, atol=5e-2, rtol=5e-2), float(jnp.max(jnp.abs(out16 - ref)))

    print("KERNEL_OK")
</pallas_src>

<mosaic_0001>
module attributes {stable_mosaic.version = 11 : i64} {
  func.func @_stats_kernel(%arg0: i32, %arg1: i32, %arg2: i32, %arg3: memref<1x256x36xf32, #tpu.memory_space<vmem>>, %arg4: memref<36x32xf32, #tpu.memory_space<vmem>>, %arg5: memref<1x1x1x32xf32, #tpu.memory_space<vmem>>, %arg6: memref<1x1x1x32xf32, #tpu.memory_space<vmem>>) attributes {dimension_semantics = [#tpu.dimension_semantics<parallel>, #tpu.dimension_semantics<parallel>, #tpu.dimension_semantics<arbitrary>], iteration_bounds = array<i64: 2, 1, 1>, scalar_prefetch = 0 : i64, scratch_operands = 0 : i64, tpu.core_type = #tpu.core_type<tc>, window_params = [{transform_indices = @transform_0, window_bounds = array<i64: 1, 256, 36>}, {pipeline_mode = #tpu.pipeline_mode<synchronous>, transform_indices = @transform_1, window_bounds = array<i64: 36, 32>}, {transform_indices = @transform_2, window_bounds = array<i64: 1, 1, 1, 32>}, {transform_indices = @transform_3, window_bounds = array<i64: 1, 1, 1, 32>}]} {
    %c0 = arith.constant 0 : index
    %c0_0 = arith.constant 0 : index
    %c0_1 = arith.constant 0 : index
    %0 = vector.load %arg3[%c0, %c0_0, %c0_1] : memref<1x256x36xf32, #tpu.memory_space<vmem>>, vector<1x256x36xf32>
    %1 = vector.shape_cast %0 : vector<1x256x36xf32> to vector<256x36xf32>
    %c0_2 = arith.constant 0 : index
    %c0_3 = arith.constant 0 : index
    %2 = vector.load %arg4[%c0_2, %c0_3] : memref<36x32xf32, #tpu.memory_space<vmem>>, vector<36x32xf32>
    %cst = arith.constant dense<0.000000e+00> : vector<256x32xf32>
    %3 = tpu.matmul %1, %2, %cst {dimension_numbers = #tpu.dot_dimension_numbers<[1], [0], [0], [1], [0, 0, 1, 1], [], []>} : vector<256x36xf32>, vector<36x32xf32>, vector<256x32xf32> -> vector<256x32xf32>
    %c0_i32 = arith.constant 0 : i32
    %4 = arith.cmpi eq, %arg2, %c0_i32 : i32
    %5 = arith.extui %4 : i1 to i32
    %c0_i32_4 = arith.constant 0 : i32
    %6 = arith.cmpi ne, %5, %c0_i32_4 : i32
    scf.if %6 {
      %cst_23 = arith.constant 0.000000e+00 : f32
      %20 = vector.broadcast %cst_23 : f32 to vector<1x1x1x32xf32>
      %c0_24 = arith.constant 0 : index
      %c0_25 = arith.constant 0 : index
      %c0_26 = arith.constant 0 : index
      %c0_27 = arith.constant 0 : index
      %21 = vector.load %arg5[%c0_24, %c0_25, %c0_26, %c0_27] : memref<1x1x1x32xf32, #tpu.memory_space<vmem>>, vector<1x1x1x32xf32>
      tpu.vector_store %arg5[%c0_24, %c0_25, %c0_26, %c0_27], %20 {strides = array<i32>} : memref<1x1x1x32xf32, #tpu.memory_space<vmem>>, vector<1x1x1x32xf32>,
      %cst_28 = arith.constant 0.000000e+00 : f32
      %22 = vector.broadcast %cst_28 : f32 to vector<1x1x1x32xf32>
      %c0_29 = arith.constant 0 : index
      %c0_30 = arith.constant 0 : index
      %c0_31 = arith.constant 0 : index
      %c0_32 = arith.constant 0 : index
      %23 = vector.load %arg6[%c0_29, %c0_30, %c0_31, %c0_32] : memref<1x1x1x32xf32, #tpu.memory_space<vmem>>, vector<1x1x1x32xf32>
      tpu.vector_store %arg6[%c0_29, %c0_30, %c0_31, %c0_32], %22 {strides = array<i32>} : memref<1x1x1x32xf32, #tpu.memory_space<vmem>>, vector<1x1x1x32xf32>,
    } else {
    }
    %c0_5 = arith.constant 0 : index
    %c0_6 = arith.constant 0 : index
    %c0_7 = arith.constant 0 : index
    %c0_8 = arith.constant 0 : index
    %7 = vector.load %arg5[%c0_5, %c0_6, %c0_7, %c0_8] : memref<1x1x1x32xf32, #tpu.memory_space<vmem>>, vector<1x1x1x32xf32>
    %cst_9 = arith.constant dense<0.000000e+00> : vector<32xf32>
    %8 = vector.multi_reduction <add>, %3, %cst_9 [0] : vector<256x32xf32> to vector<32xf32>
    %9 = vector.shape_cast %8 : vector<32xf32> to vector<1x32xf32>
    %10 = vector.shape_cast %9 : vector<1x32xf32> to vector<1x1x1x32xf32>
    %11 = arith.addf %7, %10 : vector<1x1x1x32xf32>
    %c0_10 = arith.constant 0 : index
    %c0_11 = arith.constant 0 : index
    %c0_12 = arith.constant 0 : index
    %c0_13 = arith.constant 0 : index
    %12 = vector.load %arg5[%c0_10, %c0_11, %c0_12, %c0_13] : memref<1x1x1x32xf32, #tpu.memory_space<vmem>>, vector<1x1x1x32xf32>
    tpu.vector_store %arg5[%c0_10, %c0_11, %c0_12, %c0_13], %11 {strides = array<i32>} : memref<1x1x1x32xf32, #tpu.memory_space<vmem>>, vector<1x1x1x32xf32>,
    %c0_14 = arith.constant 0 : index
    %c0_15 = arith.constant 0 : index
    %c0_16 = arith.constant 0 : index
    %c0_17 = arith.constant 0 : index
    %13 = vector.load %arg6[%c0_14, %c0_15, %c0_16, %c0_17] : memref<1x1x1x32xf32, #tpu.memory_space<vmem>>, vector<1x1x1x32xf32>
    %14 = arith.mulf %3, %3 : vector<256x32xf32>
    %cst_18 = arith.constant dense<0.000000e+00> : vector<32xf32>
    %15 = vector.multi_reduction <add>, %14, %cst_18 [0] : vector<256x32xf32> to vector<32xf32>
    %16 = vector.shape_cast %15 : vector<32xf32> to vector<1x32xf32>
    %17 = vector.shape_cast %16 : vector<1x32xf32> to vector<1x1x1x32xf32>
    %18 = arith.addf %13, %17 : vector<1x1x1x32xf32>
    %c0_19 = arith.constant 0 : index
    %c0_20 = arith.constant 0 : index
    %c0_21 = arith.constant 0 : index
    %c0_22 = arith.constant 0 : index
    %19 = vector.load %arg6[%c0_19, %c0_20, %c0_21, %c0_22] : memref<1x1x1x32xf32, #tpu.memory_space<vmem>>, vector<1x1x1x32xf32>
    tpu.vector_store %arg6[%c0_19, %c0_20, %c0_21, %c0_22], %18 {strides = array<i32>} : memref<1x1x1x32xf32, #tpu.memory_space<vmem>>, vector<1x1x1x32xf32>,
    return
  }
  func.func @transform_0(%arg0: i32, %arg1: i32, %arg2: i32) -> (i32, i32, i32) {
    %c1_i32 = arith.constant 1 : i32
    %0 = arith.muli %arg1, %c1_i32 : i32
    %1 = arith.addi %0, %arg2 : i32
    %c0_i32 = arith.constant 0 : i32
    %c0_i32_0 = arith.constant 0 : i32
    return %arg0, %1, %c0_i32 : i32, i32, i32
  }
  func.func @transform_1(%arg0: i32, %arg1: i32, %arg2: i32) -> (i32, i32) {
    %c0_i32 = arith.constant 0 : i32
    %c0_i32_0 = arith.constant 0 : i32
    %c0_i32_1 = arith.constant 0 : i32
    return %c0_i32, %c0_i32_0 : i32, i32
  }
  func.func @transform_2(%arg0: i32, %arg1: i32, %arg2: i32) -> (i32, i32, i32, i32) {
    %c0_i32 = arith.constant 0 : i32
    %c0_i32_0 = arith.constant 0 : i32
    %c0_i32_1 = arith.constant 0 : i32
    return %arg0, %arg1, %c0_i32, %c0_i32_0 : i32, i32, i32, i32
  }
  func.func @transform_3(%arg0: i32, %arg1: i32, %arg2: i32) -> (i32, i32, i32, i32) {
    %c0_i32 = arith.constant 0 : i32
    %c0_i32_0 = arith.constant 0 : i32
    %c0_i32_1 = arith.constant 0 : i32
    return %arg0, %arg1, %c0_i32, %c0_i32_0 : i32, i32, i32, i32
  }
}

module attributes {stable_mosaic.version = 11 : i64} {
  func.func @_coef_kernel(%arg0: memref<2x128xf32, #tpu.memory_space<vmem>>, %arg1: memref<2x128xf32, #tpu.memory_space<vmem>>, %arg2: memref<1x128xf32, #tpu.memory_space<vmem>>, %arg3: memref<1x128xf32, #tpu.memory_space<vmem>>, %arg4: memref<1x128xf32, #tpu.memory_space<vmem>>, %arg5: memref<128x128xf32, #tpu.memory_space<vmem>>, %arg6: memref<1x128xf32, #tpu.memory_space<vmem>>, %arg7: memref<128x512xf32, #tpu.memory_space<vmem>>, %arg8: memref<1x512xf32, #tpu.memory_space<vmem>>, %arg9: memref<4x2x128xf32, #tpu.memory_space<vmem>>) attributes {dimension_semantics = [], scalar_prefetch = 0 : i64, scratch_operands = 0 : i64, tpu.core_type = #tpu.core_type<tc>} {
    %c0 = arith.constant 0 : index
    %c0_0 = arith.constant 0 : index
    %0 = vector.load %arg0[%c0, %c0_0] : memref<2x128xf32, #tpu.memory_space<vmem>>, vector<2x128xf32>
    %c0_1 = arith.constant 0 : index
    %c0_2 = arith.constant 0 : index
    %1 = vector.load %arg1[%c0_1, %c0_2] : memref<2x128xf32, #tpu.memory_space<vmem>>, vector<2x128xf32>
    %c0_3 = arith.constant 0 : index
    %c0_4 = arith.constant 0 : index
    %2 = vector.load %arg2[%c0_3, %c0_4] : memref<1x128xf32, #tpu.memory_space<vmem>>, vector<1x128xf32>
    %cst = arith.constant 1.024000e+03 : f32
    %3 = vector.broadcast %cst : f32 to vector<1x128xf32>
    %4 = arith.mulf %3, %2 : vector<1x128xf32>
    %5 = vector.broadcast %4 : vector<1x128xf32> to vector<2x128xf32>
    %6 = arith.addf %0, %5 : vector<2x128xf32>
    %cst_5 = arith.constant 2.000000e+00 : f32
    %7 = vector.broadcast %cst_5 : f32 to vector<1x128xf32>
    %8 = arith.mulf %7, %2 : vector<1x128xf32>
    %9 = vector.broadcast %8 : vector<1x128xf32> to vector<2x128xf32>
    %10 = arith.mulf %9, %0 : vector<2x128xf32>
    %11 = arith.addf %1, %10 : vector<2x128xf32>
    %12 = arith.mulf %2, %2 : vector<1x128xf32>
    %cst_6 = arith.constant 1.024000e+03 : f32
    %13 = vector.broadcast %cst_6 : f32 to vector<1x128xf32>
    %14 = arith.mulf %13, %12 : vector<1x128xf32>
    %15 = vector.broadcast %14 : vector<1x128xf32> to vector<2x128xf32>
    %16 = arith.addf %11, %15 : vector<2x128xf32>
    %cst_7 = arith.constant dense<0.000000e+00> : vector<128xf32>
    %17 = vector.multi_reduction <add>, %6, %cst_7 [0] : vector<2x128xf32> to vector<128xf32>
    %18 = vector.shape_cast %17 : vector<128xf32> to vector<1x128xf32>
    %cst_8 = arith.constant 2.048000e+03 : f32
    %19 = vector.broadcast %cst_8 : f32 to vector<1x128xf32>
    %20 = arith.divf %18, %19 : vector<1x128xf32>
    %cst_9 = arith.constant dense<0.000000e+00> : vector<128xf32>
    %21 = vector.multi_reduction <add>, %16, %cst_9 [0] : vector<2x128xf32> to vector<128xf32>
    %22 = vector.shape_cast %21 : vector<128xf32> to vector<1x128xf32>
    %cst_10 = arith.constant 2.048000e+03 : f32
    %23 = vector.broadcast %cst_10 : f32 to vector<1x128xf32>
    %24 = arith.divf %22, %23 : vector<1x128xf32>
    %25 = arith.mulf %20, %20 : vector<1x128xf32>
    %26 = arith.subf %24, %25 : vector<1x128xf32>
    %cst_11 = arith.constant 0.000000e+00 : f32
    %27 = vector.broadcast %cst_11 : f32 to vector<1x128xf32>
    %28 = arith.maximumf %26, %27 : vector<1x128xf32>
    %c0_12 = arith.constant 0 : index
    %c0_13 = arith.constant 0 : index
    %29 = vector.load %arg3[%c0_12, %c0_13] : memref<1x128xf32, #tpu.memory_space<vmem>>, vector<1x128xf32>
    %cst_14 = arith.constant 9.99999974E-6 : f32
    %30 = vector.broadcast %cst_14 : f32 to vector<1x128xf32>
    %31 = arith.addf %28, %30 : vector<1x128xf32>
    %32 = math.rsqrt %31 : vector<1x128xf32>
    %33 = arith.mulf %29, %32 : vector<1x128xf32>
    %c0_15 = arith.constant 0 : index
    %c0_16 = arith.constant 0 : index
    %34 = vector.load %arg4[%c0_15, %c0_16] : memref<1x128xf32, #tpu.memory_space<vmem>>, vector<1x128xf32>
    %35 = arith.mulf %20, %33 : vector<1x128xf32>
    %36 = arith.subf %34, %35 : vector<1x128xf32>
    %cst_17 = arith.constant 1.024000e+03 : f32
    %37 = vector.broadcast %cst_17 : f32 to vector<2x128xf32>
    %38 = arith.divf %6, %37 : vector<2x128xf32>
    %39 = vector.broadcast %33 : vector<1x128xf32> to vector<2x128xf32>
    %40 = arith.mulf %38, %39 : vector<2x128xf32>
    %41 = vector.broadcast %36 : vector<1x128xf32> to vector<2x128xf32>
    %42 = arith.addf %40, %41 : vector<2x128xf32>
    %c0_18 = arith.constant 0 : index
    %c0_19 = arith.constant 0 : index
    %43 = vector.load %arg5[%c0_18, %c0_19] : memref<128x128xf32, #tpu.memory_space<vmem>>, vector<128x128xf32>
    %cst_20 = arith.constant dense<0.000000e+00> : vector<2x128xf32>
    %44 = tpu.matmul %42, %43, %cst_20 {dimension_numbers = #tpu.dot_dimension_numbers<[1], [0], [0], [1], [0, 0, 1, 1], [], []>} : vector<2x128xf32>, vector<128x128xf32>, vector<2x128xf32> -> vector<2x128xf32>
    %c0_21 = arith.constant 0 : index
    %c0_22 = arith.constant 0 : index
    %45 = vector.load %arg6[%c0_21, %c0_22] : memref<1x128xf32, #tpu.memory_space<vmem>>, vector<1x128xf32>
    %46 = vector.broadcast %45 : vector<1x128xf32> to vector<2x128xf32>
    %47 = arith.addf %44, %46 : vector<2x128xf32>
    %cst_23 = arith.constant 0.000000e+00 : f32
    %48 = vector.broadcast %cst_23 : f32 to vector<2x128xf32>
    %49 = arith.maximumf %47, %48 : vector<2x128xf32>
    %c0_24 = arith.constant 0 : index
    %c0_25 = arith.constant 0 : index
    %50 = vector.load %arg7[%c0_24, %c0_25] : memref<128x512xf32, #tpu.memory_space<vmem>>, vector<128x512xf32>
    %cst_26 = arith.constant dense<0.000000e+00> : vector<2x512xf32>
    %51 = tpu.matmul %49, %50, %cst_26 {dimension_numbers = #tpu.dot_dimension_numbers<[1], [0], [0], [1], [0, 0, 1, 1], [], []>} : vector<2x128xf32>, vector<128x512xf32>, vector<2x512xf32> -> vector<2x512xf32>
    %c0_27 = arith.constant 0 : index
    %c0_28 = arith.constant 0 : index
    %52 = vector.load %arg8[%c0_27, %c0_28] : memref<1x512xf32, #tpu.memory_space<vmem>>, vector<1x512xf32>
    %53 = vector.broadcast %52 : vector<1x512xf32> to vector<2x512xf32>
    %54 = arith.addf %51, %53 : vector<2x512xf32>
    %cst_29 = arith.constant 5.000000e-01 : f32
    %55 = vector.broadcast %cst_29 : f32 to vector<2x512xf32>
    %56 = arith.mulf %55, %54 : vector<2x512xf32>
    %57 = math.tanh %56 : vector<2x512xf32>
    %58 = vector.extract_strided_slice %57 {offsets = [0, 0], sizes = [2, 128], strides = [1, 1]} : vector<2x512xf32> to vector<2x128xf32>
    %cst_30 = arith.constant 1.000000e+00 : f32
    %59 = vector.broadcast %cst_30 : f32 to vector<2x128xf32>
    %60 = arith.addf %58, %59 : vector<2x128xf32>
    %61 = vector.extract_strided_slice %57 {offsets = [0, 128], sizes = [2, 128], strides = [1, 1]} : vector<2x512xf32> to vector<2x128xf32>
    %62 = vector.extract_strided_slice %57 {offsets = [0, 256], sizes = [2, 128], strides = [1, 1]} : vector<2x512xf32> to vector<2x128xf32>
    %cst_31 = arith.constant 5.000000e-01 : f32
    %63 = vector.broadcast %cst_31 : f32 to vector<2x128xf32>
    %64 = arith.mulf %63, %62 : vector<2x128xf32>
    %65 = vector.extract_strided_slice %57 {offsets = [0, 384], sizes = [2, 128], strides = [1, 1]} : vector<2x512xf32> to vector<2x128xf32>
    %cst_32 = arith.constant 5.000000e-01 : f32
    %66 = vector.broadcast %cst_32 : f32 to vector<2x128xf32>
    %67 = arith.mulf %66, %65 : vector<2x128xf32>
    %68 = arith.mulf %2, %33 : vector<1x128xf32>
    %69 = arith.addf %68, %36 : vector<1x128xf32>
    %70 = vector.broadcast %33 : vector<1x128xf32> to vector<2x128xf32>
    %71 = arith.mulf %70, %60 : vector<2x128xf32>
    %c0_33 = arith.constant 0 : index
    %c0_34 = arith.constant 0 : index
    %c0_35 = arith.constant 0 : index
    %72 = vector.load %arg9[%c0_33, %c0_34, %c0_35] : memref<4x2x128xf32, #tpu.memory_space<vmem>>, vector<1x2x128xf32>
    %73 = vector.shape_cast %72 : vector<1x2x128xf32> to vector<2x128xf32>
    %74 = vector.shape_cast %71 : vector<2x128xf32> to vector<1x2x128xf32>
    tpu.vector_store %arg9[%c0_33, %c0_34, %c0_35], %74 {strides = array<i32>} : memref<4x2x128xf32, #tpu.memory_space<vmem>>, vector<1x2x128xf32>,
    %75 = vector.broadcast %69 : vector<1x128xf32> to vector<2x128xf32>
    %76 = arith.mulf %75, %60 : vector<2x128xf32>
    %77 = arith.addf %76, %64 : vector<2x128xf32>
    %c1 = arith.constant 1 : index
    %c0_36 = arith.constant 0 : index
    %c0_37 = arith.constant 0 : index
    %78 = vector.load %arg9[%c1, %c0_36, %c0_37] : memref<4x2x128xf32, #tpu.memory_space<vmem>>, vector<1x2x128xf32>
    %79 = vector.shape_cast %78 : vector<1x2x128xf32> to vector<2x128xf32>
    %80 = vector.shape_cast %77 : vector<2x128xf32> to vector<1x2x128xf32>
    tpu.vector_store %arg9[%c1, %c0_36, %c0_37], %80 {strides = array<i32>} : memref<4x2x128xf32, #tpu.memory_space<vmem>>, vector<1x2x128xf32>,
    %81 = vector.broadcast %33 : vector<1x128xf32> to vector<2x128xf32>
    %82 = arith.mulf %81, %61 : vector<2x128xf32>
    %c2 = arith.constant 2 : index
    %c0_38 = arith.constant 0 : index
    %c0_39 = arith.constant 0 : index
    %83 = vector.load %arg9[%c2, %c0_38, %c0_39] : memref<4x2x128xf32, #tpu.memory_space<vmem>>, vector<1x2x128xf32>
    %84 = vector.shape_cast %83 : vector<1x2x128xf32> to vector<2x128xf32>
    %85 = vector.shape_cast %82 : vector<2x128xf32> to vector<1x2x128xf32>
    tpu.vector_store %arg9[%c2, %c0_38, %c0_39], %85 {strides = array<i32>} : memref<4x2x128xf32, #tpu.memory_space<vmem>>, vector<1x2x128xf32>,
    %86 = vector.broadcast %69 : vector<1x128xf32> to vector<2x128xf32>
    %87 = arith.mulf %86, %61 : vector<2x128xf32>
    %88 = arith.addf %87, %67 : vector<2x128xf32>
    %c3 = arith.constant 3 : index
    %c0_40 = arith.constant 0 : index
    %c0_41 = arith.constant 0 : index
    %89 = vector.load %arg9[%c3, %c0_40, %c0_41] : memref<4x2x128xf32, #tpu.memory_space<vmem>>, vector<1x2x128xf32>
    %90 = vector.shape_cast %89 : vector<1x2x128xf32> to vector<2x128xf32>
    %91 = vector.shape_cast %88 : vector<2x128xf32> to vector<1x2x128xf32>
    tpu.vector_store %arg9[%c3, %c0_40, %c0_41], %91 {strides = array<i32>} : memref<4x2x128xf32, #tpu.memory_space<vmem>>, vector<1x2x128xf32>,
    return
  }
}

module attributes {stable_mosaic.version = 11 : i64} {
  func.func @_apply_kernel(%arg0: i32, %arg1: i32, %arg2: i32, %arg3: memref<1x256x36xf32, #tpu.memory_space<vmem>>, %arg4: memref<36x32xf32, #tpu.memory_space<vmem>>, %arg5: memref<1x4x32xf32, #tpu.memory_space<vmem>>, %arg6: memref<1x256x32xf32, #tpu.memory_space<vmem>>) attributes {dimension_semantics = [#tpu.dimension_semantics<parallel>, #tpu.dimension_semantics<parallel>, #tpu.dimension_semantics<parallel>], iteration_bounds = array<i64: 2, 1, 1>, scalar_prefetch = 0 : i64, scratch_operands = 0 : i64, tpu.core_type = #tpu.core_type<tc>, window_params = [{transform_indices = @transform_0, window_bounds = array<i64: 1, 256, 36>}, {pipeline_mode = #tpu.pipeline_mode<synchronous>, transform_indices = @transform_1, window_bounds = array<i64: 36, 32>}, {transform_indices = @transform_2, window_bounds = array<i64: 1, 4, 32>}, {transform_indices = @transform_3, window_bounds = array<i64: 1, 256, 32>}]} {
    %c0 = arith.constant 0 : index
    %c0_0 = arith.constant 0 : index
    %c0_1 = arith.constant 0 : index
    %0 = vector.load %arg3[%c0, %c0_0, %c0_1] : memref<1x256x36xf32, #tpu.memory_space<vmem>>, vector<1x256x36xf32>
    %1 = vector.shape_cast %0 : vector<1x256x36xf32> to vector<256x36xf32>
    %c0_2 = arith.constant 0 : index
    %c0_3 = arith.constant 0 : index
    %2 = vector.load %arg4[%c0_2, %c0_3] : memref<36x32xf32, #tpu.memory_space<vmem>>, vector<36x32xf32>
    %cst = arith.constant dense<0.000000e+00> : vector<256x32xf32>
    %3 = tpu.matmul %1, %2, %cst {dimension_numbers = #tpu.dot_dimension_numbers<[1], [0], [0], [1], [0, 0, 1, 1], [], []>} : vector<256x36xf32>, vector<36x32xf32>, vector<256x32xf32> -> vector<256x32xf32>
    %c0_4 = arith.constant 0 : index
    %c0_5 = arith.constant 0 : index
    %c0_6 = arith.constant 0 : index
    %4 = vector.load %arg5[%c0_4, %c0_5, %c0_6] : memref<1x4x32xf32, #tpu.memory_space<vmem>>, vector<1x4x32xf32>
    %5 = vector.shape_cast %4 : vector<1x4x32xf32> to vector<4x32xf32>
    %6 = vector.extract_strided_slice %5 {offsets = [0, 0], sizes = [1, 32], strides = [1, 1]} : vector<4x32xf32> to vector<1x32xf32>
    %7 = vector.broadcast %6 : vector<1x32xf32> to vector<256x32xf32>
    %8 = arith.mulf %3, %7 : vector<256x32xf32>
    %9 = vector.extract_strided_slice %5 {offsets = [1, 0], sizes = [1, 32], strides = [1, 1]} : vector<4x32xf32> to vector<1x32xf32>
    %10 = vector.broadcast %9 : vector<1x32xf32> to vector<256x32xf32>
    %11 = arith.addf %8, %10 : vector<256x32xf32>
    %12 = vector.extract_strided_slice %5 {offsets = [2, 0], sizes = [1, 32], strides = [1, 1]} : vector<4x32xf32> to vector<1x32xf32>
    %13 = vector.broadcast %12 : vector<1x32xf32> to vector<256x32xf32>
    %14 = arith.mulf %3, %13 : vector<256x32xf32>
    %15 = vector.extract_strided_slice %5 {offsets = [3, 0], sizes = [1, 32], strides = [1, 1]} : vector<4x32xf32> to vector<1x32xf32>
    %16 = vector.broadcast %15 : vector<1x32xf32> to vector<256x32xf32>
    %17 = arith.addf %14, %16 : vector<256x32xf32>
    %18 = arith.maximumf %11, %17 : vector<256x32xf32>
    %c0_7 = arith.constant 0 : index
    %c0_8 = arith.constant 0 : index
    %c0_9 = arith.constant 0 : index
    %19 = vector.load %arg6[%c0_7, %c0_8, %c0_9] : memref<1x256x32xf32, #tpu.memory_space<vmem>>, vector<1x256x32xf32>
    %20 = vector.shape_cast %19 : vector<1x256x32xf32> to vector<256x32xf32>
    %21 = vector.shape_cast %18 : vector<256x32xf32> to vector<1x256x32xf32>
    tpu.vector_store %arg6[%c0_7, %c0_8, %c0_9], %21 {strides = array<i32>} : memref<1x256x32xf32, #tpu.memory_space<vmem>>, vector<1x256x32xf32>,
    return
  }
  func.func @transform_0(%arg0: i32, %arg1: i32, %arg2: i32) -> (i32, i32, i32) {
    %c1_i32 = arith.constant 1 : i32
    %0 = arith.muli %arg1, %c1_i32 : i32
    %1 = arith.addi %0, %arg2 : i32
    %c0_i32 = arith.constant 0 : i32
    %c0_i32_0 = arith.constant 0 : i32
    return %arg0, %1, %c0_i32 : i32, i32, i32
  }
  func.func @transform_1(%arg0: i32, %arg1: i32, %arg2: i32) -> (i32, i32) {
    %c0_i32 = arith.constant 0 : i32
    %c0_i32_0 = arith.constant 0 : i32
    %c0_i32_1 = arith.constant 0 : i32
    return %c0_i32, %c0_i32_0 : i32, i32
  }
  func.func @transform_2(%arg0: i32, %arg1: i32, %arg2: i32) -> (i32, i32, i32) {
    %c0_i32 = arith.constant 0 : i32
    %c0_i32_0 = arith.constant 0 : i32
    %c0_i32_1 = arith.constant 0 : i32
    return %arg0, %c0_i32, %c0_i32_0 : i32, i32, i32
  }
  func.func @transform_3(%arg0: i32, %arg1: i32, %arg2: i32) -> (i32, i32, i32) {
    %c1_i32 = arith.constant 1 : i32
    %0 = arith.muli %arg1, %c1_i32 : i32
    %1 = arith.addi %0, %arg2 : i32
    %c0_i32 = arith.constant 0 : i32
    %c0_i32_0 = arith.constant 0 : i32
    return %arg0, %1, %c0_i32 : i32, i32, i32
  }
}

</mosaic_0001>

<bundles_post_ra>
// kernel: tile.9
= control target key start
LH: loop header
LB: loop body
LE: loop exit
PB: predicated region body
PF: predicated region fallthrough
CT: control target
= control target key end

     0   :  { %vm43_vm0 = vcmask 1047556   ;;  %vm45_vm1 = vcmask 64512   ;;  %s117_s22 = smov 8   ;;  %s118_s23 = smov 16   ;;  %vm57_vm2 = vcmask 261312   ;;  %vm69_vm3 = vcmask 195712   ;;  %s165_s0 = inlined_call_operand.vmem [shape: f32[2,4,4,8], index: 0, kind: input, shape index: {}]   ;;  %s166_s1 = inlined_call_operand.vmem [shape: f32[2,4,32], index: 1, kind: output, shape index: {}]  }
   0x1   :  { %v105_v0 = vld [vmem:[%s165_s0 + $0x1c] sm:$0xf]  ;;  %v106_v1 = vld [vmem:[%s165_s0 + $0x18] sm:$0xf]  ;;  %v107_v2 = vld [vmem:[%s165_s0 + $0x14] sm:$0xf] }
   0x2   :  { %9 = vst [vmem:[#allocation1 + $0x38] sm:$0xf] %v105_v0  ;;  %14 = vst [vmem:[#allocation1 + $0x30] sm:$0xf] %v106_v1  ;;  %v108_v3 = vld [vmem:[%s165_s0 + $0x10] sm:$0xf] }
   0x3   :  { %19 = vst [vmem:[#allocation1 + $0x28] sm:$0xf] %v107_v2  ;;  %v109_v4 = vld [vmem:[%s165_s0 + $0xc] sm:$0xf]  ;;  %v110_v5 = vld [vmem:[%s165_s0 + $0x8] sm:$0xf] }
   0x4   :  { %24 = vst [vmem:[#allocation1 + $0x20] sm:$0xf] %v108_v3  ;;  %29 = vst [vmem:[#allocation1 + $0x18] sm:$0xf] %v109_v4  ;;  %v111_v6 = vld [vmem:[%s165_s0 + $0x4] sm:$0xf] }
   0x5   :  { %34 = vst [vmem:[#allocation1 + $0x10] sm:$0xf] %v110_v5  ;;  %v39_v7 = vld [vmem:[%s165_s0] sm:$0xf]  ;;  %38 = vst [vmem:[#allocation1 + $0x8] sm:$0xf] %v111_v6 }
   0x6   :  { %40 = vst [vmem:[#allocation1] sm:$0xf] %v39_v7  ;;  %s116_s0 = smov 24   ;;  %vm81_vm4 = vcmask 130112  }
   0xb   :  { %v52_v8 = vld [vmem:[#allocation1 + $0x3] ss:$8 sm:$0xf0]   ;;  %v64_v9 = vld [vmem:[#allocation1 + $0x2] ss:$8 sm:$0xf0]  }
   0xc   :  { %v76_v14 = vld [vmem:[#allocation1 + $0x1] ss:$8 sm:$0xf0]   ;;  %v42_v17 = vld [vmem:[#allocation1] ss:$8 sm:$0xf0]  }
   0xd   :  { %v50_v10 = vld [vmem:[#allocation1 + $0x3] ss:$8 sm:$0xf]   ;;  %v62_v11 = vld [vmem:[#allocation1 + $0x2] ss:$8 sm:$0xf]  }
   0xe   :  { %v54_v12 = vsel %vm43_vm0, %v52_v8, %v50_v10  ;;  %v74_v13 = vld [vmem:[#allocation1 + $0x1] ss:$8 sm:$0xf]   ;;  %v41_v16 = vld [vmem:[#allocation1] ss:$8 sm:$0xf]   ;;  %v66_v18 = vsel %vm43_vm0, %v64_v9, %v62_v11 }
   0xf   :  { %55 = vrot.lane.b32.xlu0 %v54_v12, %s116_s0  ;;  %v78_v15 = vsel %vm43_vm0, %v76_v14, %v74_v13  ;;  %v44_v19 = vsel %vm43_vm0, %v42_v17, %v41_v16 }
  0x10   :  { %79 = vrot.lane.b32.xlu1 %v78_v15, %s117_s22  ;;  %46 = vst.msk [vmem:[#allocation0] sm:$0xf] %vm45_vm1, %v44_v19   ;;  %48 = vst.msk [vmem:[#allocation0 + $0x4] sm:$0xf0] %vm45_vm1, %v44_v19  }
  0x13   :  { %67 = vrot.lane.b32.xlu0 %v66_v18, %s118_s23 }
  0x81   :  { %v56_v20 = vpop.permute.xlu0 %55  }
  0x82   :  { %58 = vst.msk [vmem:[#allocation0] sm:$0xf] %vm57_vm2, %v56_v20   ;;  %60 = vst.msk [vmem:[#allocation0 + $0x4] sm:$0xf0] %vm57_vm2, %v56_v20   ;;  %v80_v21 = vpop.permute.xlu1 %79  }
  0x85   :  { %v68_v22 = vpop.permute.xlu0 %67  }
  0x86   :  { %70 = vst.msk [vmem:[#allocation0] sm:$0xf] %vm69_vm3, %v68_v22   ;;  %72 = vst.msk [vmem:[#allocation0 + $0x4] sm:$0xf0] %vm69_vm3, %v68_v22  }
  0x87   :  { %82 = vst.msk [vmem:[#allocation0] sm:$0xf] %vm81_vm4, %v80_v21   ;;  %84 = vst.msk [vmem:[#allocation0 + $0x4] sm:$0xf0] %vm81_vm4, %v80_v21  }
  0x8e   :  { %v89_v23 = vld [vmem:[#allocation0] sm:$0xf]  ;;  %v94_v24 = vld [vmem:[#allocation0 + $0x8] sm:$0xf] }
  0x8f   :  { %92 = vst [vmem:[%s166_s1] sm:$0xf] %v89_v23  ;;  %112 = vst [vmem:[%s166_s1 + $0x4] sm:$0xf] %v94_v24 }

// kernel: up_conv_pallas.3
= control target key start
LH: loop header
LB: loop body
LE: loop exit
PB: predicated region body
PF: predicated region fallthrough
CT: control target
= control target key end

     0   :  { %s1109_s12 = smov 0   ;;  %s1111_s13 = smov 0   ;;  %s1344_s0 = inlined_call_operand.vmem [shape: f32[2,256,36], index: 0, kind: input, shape index: {}]   ;;  %s1345_s1 = inlined_call_operand.vmem [shape: f32[36,32], index: 1, kind: input, shape index: {}]   ;;  %s1346_s2 = inlined_call_operand.vmem [shape: f32[2,1,1,32], index: 2, kind: output, shape index: {0}]   ;;  %s1347_s3 = inlined_call_operand.vmem [shape: f32[2,1,1,32], index: 3, kind: output, shape index: {1}]  }
   0x1   :  { %s1113_s14 = smov 0  }
   0x2 LB: > { %s33_s15 = sadd.s32 1, %s1082_s13  ;;  %p895_p0 = scmp.ge.s32.totalorder %s1086_s14, 1  ;;  %s1086_s14 = sphi %s1113_s14, %s14_s14   ;;  %s1082_s13 = sphi %s1111_s13, %s1349_s13   ;;  %s1078_s12 = sphi %s1109_s12, %s1348_s12  }
   0x3   : > { %p35_p1 = scmp.ge.s32.totalorder %s33_s15, 2  ;;  %p174_p2 = scmp.lt.s32.totalorder %s1086_s14, 3 }
   0x5   : > { %s1351_s15 = smov (%p35_p1, %s33_s15), 0  ;;  %p175_p3 = pnand %p895_p0, %p174_p2 }
   0x6   : > { %p212_p4 = scmp.lt.s32.totalorder (!%p175_p3), %s1078_s12, 1 }
   0x7   : > { %178 = sbr.rel (%p175_p3) target bundleno = 300 (0x12c), region = 28 }
   0xc   : > { %v270_v0 = vld [vmem:[%s1345_s1 + $0x20] sm:$0xf]  ;;  %vm368_vm0 = vcmask 1043456   ;;  %v269_v1 = vld [vmem:[%s1345_s1 + $0x18] sm:$0xff]  ;;  %v268_v2 = vld [vmem:[%s1345_s1 + $0x10] sm:$0xff]  ;;  %s1353_s12 = smov (!%p212_p4, %s1078_s12), 1 }
   0xd   : > { %971 = vmatprep.subr.msk.mxu0 %vm368_vm0, %v270_v0  ;;  %1029 = vmatprep.subr.msk.mxu1 %vm368_vm0, %v270_v0  ;;  %v267_v3 = vld [vmem:[%s1345_s1 + $0x8] sm:$0xff]  ;;  %s933_s24 = sshll.u32 %s1353_s12, 8  ;;  %vm271_vm1 = vcmask 293888   ;;  %v266_v4 = vld [vmem:[%s1345_s1] sm:$0xff]  ;;  %s1218_s5 = scalar_lea.vmem %s1346_s2, %s1353_s12  ;;  %vm601_vm2 = vcmask 253952   ;;  %v1088_v37 = vmov 0.0  }
   0xe   : > { %972 = vmatpush3.msk.msra.mxu0 %vm368_vm0, %v270_v0  ;;  %1034 = vmatpush3.msk.msra.mxu1 %vm368_vm0, %v270_v0  ;;  %s1145_s27 = scalar_lea.vmem %s1344_s0, %s933_s24  ;;  %s1224_s8 = scalar_lea.vmem %s1347_s3, %s1353_s12  ;;  %602 = vst.msk [vmem:[%s1218_s5] sm:$0x1] %vm601_vm2, %v1088_v37  ;;  %vm605_vm3 = vcmask 261120  }
   0xf   : > { %973 = vmatprep.subr.mxu0 %v269_v1  ;;  %1030 = vmatprep.subr.mxu1 %v269_v1  ;;  %v234_v5 = vld [vmem:[%s1145_s27] sm:$0xff]  ;;  %v235_v6 = vld [vmem:[%s1145_s27 + $0x8] sm:$0xff]  ;;  %v236_v7 = vld [vmem:[%s1145_s27 + $0x10] sm:$0xff]  ;;  %603 = vst.msk [vmem:[%s1224_s8] sm:$0x1] %vm601_vm2, %v1088_v37 }
  0x10   : > { %974 = vmatpush3.msra.mxu0 %v269_v1  ;;  %1035 = vmatpush3.msra.mxu1 %v269_v1  ;;  %v250_v8 = vld [vmem:[%s1145_s27 + $0x80] sm:$0xff]  ;;  %v251_v9 = vld [vmem:[%s1145_s27 + $0x88] sm:$0xff]  ;;  %v237_v10 = vld [vmem:[%s1145_s27 + $0x18] sm:$0xff] }
  0x11   : > { %975 = vmatprep.subr.mxu0 %v268_v2  ;;  %1031 = vmatprep.subr.mxu1 %v268_v2  ;;  %v252_v11 = vld [vmem:[%s1145_s27 + $0x90] sm:$0xff]  ;;  %v238_v12 = vld [vmem:[%s1145_s27 + $0x20] sm:$0xff]  ;;  %v253_v13 = vld [vmem:[%s1145_s27 + $0x98] sm:$0xff] }
  0x12   : > { %976 = vmatpush3.msra.mxu0 %v268_v2  ;;  %1036 = vmatpush3.msra.mxu1 %v268_v2  ;;  %v254_v14 = vld [vmem:[%s1145_s27 + $0xa0] sm:$0xff]  ;;  %v239_v15 = vld [vmem:[%s1145_s27 + $0x28] sm:$0xff]  ;;  %v240_v16 = vld [vmem:[%s1145_s27 + $0x30] sm:$0xff] }
  0x13   : > { %977 = vmatprep.subr.mxu0 %v267_v3  ;;  %981 = vmatprep.mubr.msk.f32.mxu0 %vm271_vm1, %v234_v5  ;;  %v255_v17 = vld [vmem:[%s1145_s27 + $0xa8] sm:$0xff]  ;;  %v256_v18 = vld [vmem:[%s1145_s27 + $0xb0] sm:$0xff]  ;;  %v241_v19 = vld [vmem:[%s1145_s27 + $0x38] sm:$0xff] }
  0x14   : > { %978 = vmatpush3.msra.mxu0 %v267_v3  ;;  %1032 = vmatprep.subr.mxu1 %v267_v3  ;;  %v242_v20 = vld [vmem:[%s1145_s27 + $0x40] sm:$0xff]  ;;  %v257_v21 = vld [vmem:[%s1145_s27 + $0xb8] sm:$0xff]  ;;  %v243_v23 = vld [vmem:[%s1145_s27 + $0x48] sm:$0xff] }
  0x15   : > { %979 = vmatprep.subr.mxu0 %v266_v4  ;;  %1037 = vmatpush3.msra.mxu1 %v267_v3  ;;  %v258_v22 = vld [vmem:[%s1145_s27 + $0xc0] sm:$0xff]  ;;  %v244_v24 = vld [vmem:[%s1145_s27 + $0x50] sm:$0xff]  ;;  %v259_v25 = vld [vmem:[%s1145_s27 + $0xc8] sm:$0xff] }
  0x16   : > { %980 = vmatpush3.msra.mxu0 %v266_v4  ;;  %1033 = vmatprep.subr.mxu1 %v266_v4  ;;  %v260_v26 = vld [vmem:[%s1145_s27 + $0xd0] sm:$0xff]  ;;  %v245_v27 = vld [vmem:[%s1145_s27 + $0x58] sm:$0xff]  ;;  %v246_v28 = vld [vmem:[%s1145_s27 + $0x60] sm:$0xff] }
  0x17   : > { %982 = vmatmul.mubr.msk.f32.vlgmr.msra.gmra.mxu0 %vm271_vm1, %v235_v6  ;;  %1038 = vmatpush3.msra.mxu1 %v266_v4  ;;  %v261_v29 = vld [vmem:[%s1145_s27 + $0xd8] sm:$0xff]  ;;  %v262_v30 = vld [vmem:[%s1145_s27 + $0xe0] sm:$0xff]  ;;  %v247_v31 = vld [vmem:[%s1145_s27 + $0x68] sm:$0xff] }
  0x18   : > { %984 = vmatprep.mubr.msk.f32.mxu0 %vm271_vm1, %v236_v7  ;;  %1005 = vmatprep.mubr.msk.f32.mxu1 %vm271_vm1, %v250_v8  ;;  %v248_v32 = vld [vmem:[%s1145_s27 + $0x70] sm:$0xff]  ;;  %v263_v33 = vld [vmem:[%s1145_s27 + $0xe8] sm:$0xff]  ;;  %v249_v35 = vld [vmem:[%s1145_s27 + $0x78] sm:$0xff] }
  0x19   : > { %1006 = vmatmul.mubr.msk.f32.vlgmr.msra.gmra.mxu1 %vm271_vm1, %v251_v9  ;;  %v264_v34 = vld [vmem:[%s1145_s27 + $0xf0] sm:$0xff]  ;;  %v265_v36 = vld [vmem:[%s1145_s27 + $0xf8] sm:$0xff] }
  0x1a   : > { %1008 = vmatprep.mubr.msk.f32.mxu1 %vm271_vm1, %v252_v11 }
  0x1b   : > { %985 = vmatmul.mubr.msk.f32.gmra.mxu0 %vm271_vm1, %v237_v10 }
  0x1c   : > { %987 = vmatprep.mubr.msk.f32.mxu0 %vm271_vm1, %v238_v12 }
  0x1d   : > { %1009 = vmatmul.mubr.msk.f32.gmra.mxu1 %vm271_vm1, %v253_v13 }
  0x1e   : > { %1011 = vmatprep.mubr.msk.f32.mxu1 %vm271_vm1, %v254_v14 }
  0x1f   : > { %988 = vmatmul.mubr.msk.f32.gmra.mxu0 %vm271_vm1, %v239_v15 }
  0x20   : > { %990 = vmatprep.mubr.msk.f32.mxu0 %vm271_vm1, %v240_v16 }
  0x21   : > { %1012 = vmatmul.mubr.msk.f32.gmra.mxu1 %vm271_vm1, %v255_v17 }
  0x22   : > { %1014 = vmatprep.mubr.msk.f32.mxu1 %vm271_vm1, %v256_v18 }
  0x23   : > { %991 = vmatmul.mubr.msk.f32.gmra.mxu0 %vm271_vm1, %v241_v19 }
  0x24   : > { %993 = vmatprep.mubr.msk.f32.mxu0 %vm271_vm1, %v242_v20 }
  0x25   : > { %1015 = vmatmul.mubr.msk.f32.gmra.mxu1 %vm271_vm1, %v257_v21 }
  0x26   : > { %1017 = vmatprep.mubr.msk.f32.mxu1 %vm271_vm1, %v258_v22 }
  0x27   : > { %994 = vmatmul.mubr.msk.f32.gmra.mxu0 %vm271_vm1, %v243_v23 }
  0x28   : > { %996 = vmatprep.mubr.msk.f32.mxu0 %vm271_vm1, %v244_v24 }
  0x29   : > { %1018 = vmatmul.mubr.msk.f32.gmra.mxu1 %vm271_vm1, %v259_v25 }
  0x2a   : > { %1020 = vmatprep.mubr.msk.f32.mxu1 %vm271_vm1, %v260_v26 }
  0x2b   : > { %997 = vmatmul.mubr.msk.f32.gmra.mxu0 %vm271_vm1, %v245_v27 }
  0x2c   : > { %999 = vmatprep.mubr.msk.f32.mxu0 %vm271_vm1, %v246_v28 }
  0x2d   : > { %1021 = vmatmul.mubr.msk.f32.gmra.mxu1 %vm271_vm1, %v261_v29 }
  0x2e   : > { %1023 = vmatprep.mubr.msk.f32.mxu1 %vm271_vm1, %v262_v30 }
  0x2f   : > { %1000 = vmatmul.mubr.msk.f32.gmra.mxu0 %vm271_vm1, %v247_v31 }
  0x30   : > { %1002 = vmatprep.mubr.msk.f32.mxu0 %vm271_vm1, %v248_v32 }
  0x31   : > { %1024 = vmatmul.mubr.msk.f32.gmra.mxu1 %vm271_vm1, %v263_v33 }
  0x32   : > { %1026 = vmatprep.mubr.msk.f32.mxu1 %vm271_vm1, %v264_v34 }
  0x33   : > { %1003 = vmatmul.mubr.msk.f32.gmra.mxu0 %vm271_vm1, %v249_v35 }
  0x35   : > { %1027 = vmatmul.mubr.msk.f32.gmra.mxu1 %vm271_vm1, %v265_v36 }
  0xd7   : > { %v983_v38 = vpop.f32.mrf.mxu0 }
  0xd8   : > { %v680_v41 = vmul.f32 %v983_v38, %v983_v38  ;;  %v607_v46 = vsel %vm605_vm3, %v983_v38, 0.0 }
  0xd9   : > { %v438_v39 = vpop.f32.mrf.mxu0  ;;  %v1230_v40 = vpop.f32.mrf.mxu1 }
  0xda   : > { %v606_v42 = vsel %vm605_vm3, %v438_v39, 0.0  ;;  %v679_v43 = vmul.f32 %v438_v39, %v438_v39  ;;  %v712_v51 = vsel %vm605_vm3, %v680_v41, 0.0 }
  0xdb   : > { %v986_v44 = vpop.f32.mrf.mxu0  ;;  %v1233_v45 = vpop.f32.mrf.mxu1  ;;  %v608_v48 = vadd.f32 %v607_v46, %v606_v42 }
  0xdc   : > { %v711_v47 = vsel %vm605_vm3, %v679_v43, 0.0  ;;  %v682_v52 = vmul.f32 %v986_v44, %v986_v44  ;;  %v611_v58 = vsel %vm605_vm3, %v986_v44, 0.0 }
  0xdd   : > { %v448_v49 = vpop.f32.mrf.mxu0  ;;  %v1237_v50 = vpop.f32.mrf.mxu1  ;;  %v713_v55 = vadd.f32 %v712_v51, %v711_v47 }
  0xde   : > { %v609_v53 = vsel %vm605_vm3, %v448_v49, 0.0  ;;  %v681_v54 = vmul.f32 %v448_v49, %v448_v49  ;;  %v716_v0 = vsel %vm605_vm3, %v682_v52, 0.0 }
  0xdf   : > { %v610_v56 = vadd.f32 %v609_v53, %v608_v48  ;;  %v989_v57 = vpop.f32.mrf.mxu0  ;;  %v1243_v63 = vpop.f32.mrf.mxu1 }
  0xe0   : > { %v714_v59 = vsel %vm605_vm3, %v681_v54, 0.0  ;;  %v684_v1 = vmul.f32 %v989_v57, %v989_v57  ;;  %v615_v7 = vsel %vm605_vm3, %v989_v57, 0.0 }
  0xe1   : > { %v715_v60 = vadd.f32 %v714_v59, %v713_v55  ;;  %v458_v61 = vpop.f32.mrf.mxu0  ;;  %v612_v62 = vadd.f32 %v611_v58, %v610_v56  ;;  %v1249_v12 = vpop.f32.mrf.mxu1 }
  0xe2   : > { %v613_v2 = vsel %vm605_vm3, %v458_v61, 0.0  ;;  %v683_v3 = vmul.f32 %v458_v61, %v458_v61  ;;  %v720_v13 = vsel %vm605_vm3, %v684_v1, 0.0 }
  0xe3   : > { %v614_v4 = vadd.f32 %v613_v2, %v612_v62  ;;  %v717_v5 = vadd.f32 %v716_v0, %v715_v60  ;;  %v992_v6 = vpop.f32.mrf.mxu0  ;;  %v1255_v25 = vpop.f32.mrf.mxu1 }
  0xe4   : > { %v718_v8 = vsel %vm605_vm3, %v683_v3, 0.0  ;;  %v686_v14 = vmul.f32 %v992_v6, %v992_v6  ;;  %v619_v20 = vsel %vm605_vm3, %v992_v6, 0.0 }
  0xe5   : > { %v719_v9 = vadd.f32 %v718_v8, %v717_v5  ;;  %v468_v10 = vpop.f32.mrf.mxu0  ;;  %v616_v11 = vadd.f32 %v615_v7, %v614_v4  ;;  %v1261_v38 = vpop.f32.mrf.mxu1 }
  0xe6   : > { %v617_v15 = vsel %vm605_vm3, %v468_v10, 0.0  ;;  %v685_v16 = vmul.f32 %v468_v10, %v468_v10  ;;  %v724_v26 = vsel %vm605_vm3, %v686_v14, 0.0  ;;  %v695_v14 = vmul.f32 %v1233_v45, %v1233_v45 }
  0xe7   : > { %v618_v17 = vadd.f32 %v617_v15, %v616_v11  ;;  %v721_v18 = vadd.f32 %v720_v13, %v719_v9  ;;  %v995_v19 = vpop.f32.mrf.mxu0  ;;  %v548_v54 = vpop.f32.mrf.mxu1 }
  0xe8   : > { %v722_v21 = vsel %vm605_vm3, %v685_v16, 0.0  ;;  %v688_v27 = vmul.f32 %v995_v19, %v995_v19  ;;  %v623_v33 = vsel %vm605_vm3, %v995_v19, 0.0  ;;  %v696_v19 = vmul.f32 %v1230_v40, %v1230_v40 }
  0xe9   : > { %v723_v22 = vadd.f32 %v722_v21, %v721_v18  ;;  %v478_v23 = vpop.f32.mrf.mxu0  ;;  %v620_v24 = vadd.f32 %v619_v20, %v618_v17  ;;  %v1019_v4 = vpop.f32.mrf.mxu1  ;;  %v637_v20 = vsel %vm605_vm3, %v1233_v45, 0.0  ;;  %v641_v45 = vsel %vm605_vm3, %v1243_v63, 0.0 }
  0xea   : > { %v621_v28 = vsel %vm605_vm3, %v478_v23, 0.0  ;;  %v687_v29 = vmul.f32 %v478_v23, %v478_v23  ;;  %v728_v39 = vsel %vm605_vm3, %v688_v27, 0.0  ;;  %v639_v23 = vsel %vm605_vm3, %v1230_v40, 0.0 }
  0xeb   : > { %v622_v30 = vadd.f32 %v621_v28, %v620_v24  ;;  %v725_v31 = vadd.f32 %v724_v26, %v723_v22  ;;  %v998_v32 = vpop.f32.mrf.mxu0  ;;  %v558_v17 = vpop.f32.mrf.mxu1  ;;  %v742_v24 = vsel %vm605_vm3, %v695_v14, 0.0  ;;  %v697_v26 = vmul.f32 %v1243_v63, %v1243_v63 }
  0xec   : > { %v726_v34 = vsel %vm605_vm3, %v687_v29, 0.0  ;;  %v690_v41 = vmul.f32 %v998_v32, %v998_v32  ;;  %v627_v48 = vsel %vm605_vm3, %v998_v32, 0.0  ;;  %v643_v40 = vsel %vm605_vm3, %v1237_v50, 0.0 }
  0xed   : > { %v727_v35 = vadd.f32 %v726_v34, %v725_v31  ;;  %v488_v36 = vpop.f32.mrf.mxu0  ;;  %v624_v37 = vadd.f32 %v623_v33, %v622_v30  ;;  %v1022_v29 = vpop.f32.mrf.mxu1  ;;  %v744_v30 = vsel %vm605_vm3, %v696_v19, 0.0  ;;  %v698_v31 = vmul.f32 %v1237_v50, %v1237_v50 }
  0xee   : > { %v625_v42 = vsel %vm605_vm3, %v488_v36, 0.0  ;;  %v689_v43 = vmul.f32 %v488_v36, %v488_v36  ;;  %v732_v55 = vsel %vm605_vm3, %v690_v41, 0.0  ;;  %v746_v34 = vsel %vm605_vm3, %v697_v26, 0.0 }
  0xef   : > { %v626_v44 = vadd.f32 %v625_v42, %v624_v37  ;;  %v729_v46 = vadd.f32 %v728_v39, %v727_v35  ;;  %v1001_v47 = vpop.f32.mrf.mxu0  ;;  %v699_v35 = vmul.f32 %v1255_v25, %v1255_v25  ;;  %v568_v39 = vpop.f32.mrf.mxu1  ;;  %v748_v41 = vsel %vm605_vm3, %v698_v31, 0.0 }
  0xf0   : > { %v730_v49 = vsel %vm605_vm3, %v689_v43, 0.0  ;;  %v692_v56 = vmul.f32 %v1001_v47, %v1001_v47  ;;  %v631_v62 = vsel %vm605_vm3, %v1001_v47, 0.0  ;;  %v700_v42 = vmul.f32 %v1249_v12, %v1249_v12 }
  0xf1   : > { %v731_v51 = vadd.f32 %v730_v49, %v729_v46  ;;  %v498_v52 = vpop.f32.mrf.mxu0  ;;  %v628_v53 = vadd.f32 %v627_v48, %v626_v44  ;;  %v645_v63 = vsel %vm605_vm3, %v1255_v25, 0.0  ;;  %v647_v50 = vsel %vm605_vm3, %v1249_v12, 0.0 }
  0xf2   : > { %v629_v57 = vsel %vm605_vm3, %v498_v52, 0.0  ;;  %v691_v58 = vmul.f32 %v498_v52, %v498_v52  ;;  %v736_v5 = vsel %vm605_vm3, %v692_v56, 0.0  ;;  %v750_v46 = vsel %vm605_vm3, %v699_v35, 0.0 }
  0xf3   : > { %v630_v59 = vadd.f32 %v629_v57, %v628_v53  ;;  %v733_v60 = vadd.f32 %v732_v55, %v731_v51  ;;  %v1004_v61 = vpop.f32.mrf.mxu0  ;;  %v701_v47 = vmul.f32 %v548_v54, %v548_v54  ;;  %v1025_v51 = vpop.f32.mrf.mxu1  ;;  %v752_v52 = vsel %vm605_vm3, %v700_v42, 0.0 }
  0xf4   : > { %v734_v0 = vsel %vm605_vm3, %v691_v58, 0.0  ;;  %v694_v6 = vmul.f32 %v1004_v61, %v1004_v61  ;;  %v635_v11 = vsel %vm605_vm3, %v1004_v61, 0.0  ;;  %v702_v53 = vmul.f32 %v1261_v38, %v1261_v38 }
  0xf5   : > { %v735_v1 = vadd.f32 %v734_v0, %v733_v60  ;;  %v508_v2 = vpop.f32.mrf.mxu0  ;;  %v632_v3 = vadd.f32 %v631_v62, %v630_v59  ;;  %v649_v55 = vsel %vm605_vm3, %v548_v54, 0.0  ;;  %v651_v57 = vsel %vm605_vm3, %v1261_v38, 0.0  ;;  %v578_v61 = vpop.f32.mrf.mxu1 }
  0xf6   : > { %v633_v7 = vsel %vm605_vm3, %v508_v2, 0.0  ;;  %v693_v8 = vmul.f32 %v508_v2, %v508_v2  ;;  %v740_v18 = vsel %vm605_vm3, %v694_v6, 0.0  ;;  %v754_v12 = vsel %vm605_vm3, %v701_v47, 0.0 }
  0xf7   : > { %v634_v9 = vadd.f32 %v633_v7, %v632_v3  ;;  %v737_v10 = vadd.f32 %v736_v5, %v735_v1  ;;  %v703_v58 = vmul.f32 %v558_v17, %v558_v17  ;;  %v756_v62 = vsel %vm605_vm3, %v702_v53, 0.0 }
  0xf8   : > { %v738_v13 = vsel %vm605_vm3, %v693_v8, 0.0  ;;  %v704_v0 = vmul.f32 %v1019_v4, %v1019_v4  ;;  %v653_v1 = vsel %vm605_vm3, %v558_v17, 0.0  ;;  %v655_v54 = vsel %vm605_vm3, %v1019_v4, 0.0  ;;  %v1028_v8 = vpop.f32.mrf.mxu1 }
  0xf9   : > { %v636_v15 = vadd.f32 %v635_v11, %v634_v9  ;;  %v739_v16 = vadd.f32 %v738_v13, %v737_v10  ;;  %v758_v5 = vsel %vm605_vm3, %v703_v58, 0.0  ;;  %v705_v6 = vmul.f32 %v568_v39, %v568_v39 }
  0xfa   : > { %v760_v9 = vsel %vm605_vm3, %v704_v0, 0.0  ;;  %v706_v10 = vmul.f32 %v1022_v29, %v1022_v29  ;;  %v657_v11 = vsel %vm605_vm3, %v568_v39, 0.0  ;;  %v707_v17 = vmul.f32 %v578_v61, %v578_v61  ;;  %v588_v19 = vpop.f32.mrf.mxu1 }
  0xfb   : > { %v741_v21 = vadd.f32 %v740_v18, %v739_v16  ;;  %v638_v22 = vadd.f32 %v637_v20, %v636_v15  ;;  %v659_v15 = vsel %vm605_vm3, %v1022_v29, 0.0  ;;  %v762_v16 = vsel %vm605_vm3, %v705_v6, 0.0 }
  0xfc   : > { %v764_v20 = vsel %vm605_vm3, %v706_v10, 0.0  ;;  %v663_v26 = vsel %vm605_vm3, %v1025_v51, 0.0 }
  0xfd   : > { %v743_v27 = vadd.f32 %v742_v24, %v741_v21  ;;  %v640_v28 = vadd.f32 %v639_v23, %v638_v22  ;;  %v708_v21 = vmul.f32 %v1025_v51, %v1025_v51  ;;  %v661_v22 = vsel %vm605_vm3, %v578_v61, 0.0  ;;  %v604_v51 = vld [vmem:[%s1218_s5] sm:$0x1] }
  0xff   : > { %v642_v32 = vadd.f32 %v641_v45, %v640_v28  ;;  %v745_v33 = vadd.f32 %v744_v30, %v743_v27  ;;  %v766_v27 = vsel %vm605_vm3, %v707_v17, 0.0  ;;  %v709_v28 = vmul.f32 %v588_v19, %v588_v19 }
 0x100   : > { %v768_v31 = vsel %vm605_vm3, %v708_v21, 0.0  ;;  %v710_v45 = vmul.f32 %v1028_v8, %v1028_v8 }
 0x101   : > { %v747_v36 = vadd.f32 %v746_v34, %v745_v33  ;;  %v644_v37 = vadd.f32 %v643_v40, %v642_v32  ;;  %v665_v32 = vsel %vm605_vm3, %v588_v19, 0.0  ;;  %v667_v34 = vsel %vm605_vm3, %v1028_v8, 0.0 }
 0x102   : > { %v770_v35 = vsel %vm605_vm3, %v709_v28, 0.0  ;;  %v772_v39 = vsel %vm605_vm3, %v710_v45, 0.0 }
 0x103   : > { %v646_v43 = vadd.f32 %v645_v63, %v644_v37  ;;  %v749_v44 = vadd.f32 %v748_v41, %v747_v36 }
 0x105   : > { %v751_v48 = vadd.f32 %v750_v46, %v749_v44  ;;  %v648_v49 = vadd.f32 %v647_v50, %v646_v43 }
 0x107   : > { %v650_v56 = vadd.f32 %v649_v55, %v648_v49  ;;  %v753_v25 = vadd.f32 %v752_v52, %v751_v48  ;;  %v678_v55 = vld [vmem:[%s1224_s8] sm:$0x1] }
 0x109   : > { %v755_v59 = vadd.f32 %v754_v12, %v753_v25  ;;  %v652_v60 = vadd.f32 %v651_v57, %v650_v56 }
 0x10b   : > { %v654_v2 = vadd.f32 %v653_v1, %v652_v60  ;;  %v757_v3 = vadd.f32 %v756_v62, %v755_v59 }
 0x10d   : > { %v759_v7 = vadd.f32 %v758_v5, %v757_v3  ;;  %v656_v38 = vadd.f32 %v655_v54, %v654_v2 }
 0x10f   : > { %v658_v13 = vadd.f32 %v657_v11, %v656_v38  ;;  %v761_v14 = vadd.f32 %v760_v9, %v759_v7 }
 0x111   : > { %v763_v18 = vadd.f32 %v762_v16, %v761_v14  ;;  %v660_v4 = vadd.f32 %v659_v15, %v658_v13 }
 0x113   : > { %v662_v23 = vadd.f32 %v661_v22, %v660_v4  ;;  %v765_v24 = vadd.f32 %v764_v20, %v763_v18 }
 0x115   : > { %v767_v30 = vadd.f32 %v766_v27, %v765_v24  ;;  %v664_v29 = vadd.f32 %v663_v26, %v662_v23 }
 0x117   : > { %v666_v33 = vadd.f32 %v665_v32, %v664_v29  ;;  %v769_v40 = vadd.f32 %v768_v31, %v767_v30 }
 0x119   : > { %v668_v36 = vadd.f32 %v667_v34, %v666_v33  ;;  %v771_v37 = vadd.f32 %v770_v35, %v769_v40 }
 0x11b   : > { %v669_v41 = vrot.slane %v668_v36, 4  ;;  %v773_v42 = vadd.f32 %v772_v39, %v771_v37 }
 0x11d   : > { %v670_v63 = vadd.f32 %v669_v41, %v668_v36  ;;  %v774_v43 = vrot.slane %v773_v42, 4 }
 0x11f   : > { %v671_v44 = vrot.slane %v670_v63, 2  ;;  %v775_v50 = vadd.f32 %v774_v43, %v773_v42 }
 0x121   : > { %v672_v46 = vadd.f32 %v671_v44, %v670_v63  ;;  %v776_v47 = vrot.slane %v775_v50, 2 }
 0x123   : > { %v673_v48 = vrot.slane %v672_v46, 1  ;;  %v777_v49 = vadd.f32 %v776_v47, %v775_v50 }
 0x125   : > { %v674_v52 = vadd.f32 %v673_v48, %v672_v46  ;;  %v778_v53 = vrot.slane %v777_v49, 1 }
 0x127   : > { %v675_v56 = vadd.f32 %v674_v52, %v604_v51  ;;  %v779_v25 = vadd.f32 %v778_v53, %v777_v49 }
 0x129   : > { %677 = vst.msk [vmem:[%s1218_s5] sm:$0x1] %vm601_vm2, %v675_v56  ;;  %v780_v57 = vadd.f32 %v779_v25, %v678_v55 }
 0x12b   : > { %781 = vst.msk [vmem:[%s1224_s8] sm:$0x1] %vm601_vm2, %v780_v57 }
 0x12c PF: > { %s14_s14 = sadd.s32 1, %s1086_s14   ;;  %s1348_s12 = smov %s1082_s13 }
 0x12d   : > { %p11_p5 = scmp.ge.s32.totalorder %s14_s14, 4   ;;  %s1349_s13 = smov %s1351_s15 }
 0x12f   :  { %13 = sbr.rel (!%p11_p5) target bundleno = 2 (0x2), region = 74 }

// kernel: up_conv_pallas.4
= control target key start
LH: loop header
LB: loop body
LE: loop exit
PB: predicated region body
PF: predicated region fallthrough
CT: control target
= control target key end

     0   :  { %v37_v0 = vlaneseq  ;;  %v531_v1 = vmov 0.0   ;;  %vm532_vm0 = vmmov 0   ;;  %vm61_vm1 = vcmask 1041408   ;;  %s911_s5 = inlined_call_operand.vmem [shape: f32[128,128], index: 5, kind: input, shape index: {}]   ;;  %s912_s2 = inlined_call_operand.vmem [shape: f32[1,128], index: 2, kind: input, shape index: {}]   ;;  %s913_s7 = inlined_call_operand.vmem [shape: f32[128,512], index: 7, kind: input, shape index: {}]   ;;  %s914_s0 = inlined_call_operand.vmem [shape: f32[2,128], index: 0, kind: input, shape index: {}]   ;;  %s915_s1 = inlined_call_operand.vmem [shape: f32[2,128], index: 1, kind: input, shape index: {}]   ;;  %s916_s3 = inlined_call_operand.vmem [shape: f32[1,128], index: 3, kind: input, shape index: {}]   ;;  %s917_s4 = inlined_call_operand.vmem [shape: f32[1,128], index: 4, kind: input, shape index: {}]   ;;  %s918_s6 = inlined_call_operand.vmem [shape: f32[1,128], index: 6, kind: input, shape index: {}]   ;;  %s919_s8 = inlined_call_operand.vmem [shape: f32[1,512], index: 8, kind: input, shape index: {}]   ;;  %s920_s9 = inlined_call_operand.vmem [shape: f32[4,2,128], index: 9, kind: output, shape index: {}]  }
   0x1   :  { %484 = vmatprep.subr.mxu0 %v531_v1  ;;  %v120_v2 = vld [vmem:[%s911_s5 + $0x78] sm:$0xff]  ;;  %v119_v3 = vld [vmem:[%s911_s5 + $0x70] sm:$0xff]  ;;  %516 = vmatprep.mubr.msk.f32.mxu0 %vm532_vm0, %v531_v1  ;;  %v118_v5 = vld [vmem:[%s911_s5 + $0x68] sm:$0xff] }
   0x2   :  { %485 = vmatpush3.msra.mxu0 %v120_v2  ;;  %v591_v4 = vshrl.u32 %v37_v0, 7  ;;  %349 = vmatprep.mubr.f32.mxu1 %v531_v1  ;;  %v117_v6 = vld [vmem:[%s911_s5 + $0x60] sm:$0xff]  ;;  %v116_v8 = vld [vmem:[%s911_s5 + $0x58] sm:$0xff]  ;;  %v260_v13 = vld [vmem:[%s913_s7 + $0x1e8] sm:$0xff] }
   0x3   :  { %486 = vmatprep.subr.mxu0 %v531_v1  ;;  %v612_v9 = vld [vmem:[%s912_s2] sm:$0x1]  ;;  %v115_v15 = vld [vmem:[%s911_s5 + $0x50] sm:$0xff]  ;;  %285 = vmatprep.subr.mxu1 %v260_v13  ;;  %v256_v17 = vld [vmem:[%s913_s7 + $0x1c8] sm:$0xff] }
   0x4   :  { %487 = vmatpush3.msra.mxu0 %v119_v3  ;;  %v603_v7 = vsub.s32 0, %v591_v4  ;;  %v35_v10 = vmul.f32 1024.0, %v612_v9  ;;  %v43_v11 = vmul.f32 2.0, %v612_v9  ;;  %v52_v12 = vmul.f32 %v612_v9, %v612_v9  ;;  %v259_v14 = vld [vmem:[%s913_s7 + $0x1e0] sm:$0xff]  ;;  %v252_v22 = vld [vmem:[%s913_s7 + $0x1a8] sm:$0xff]  ;;  %v112_v35 = vld [vmem:[%s911_s5 + $0x38] sm:$0xff] }
   0x5   :  { %488 = vmatprep.subr.mxu0 %v531_v1  ;;  %v32_v16 = vld [vmem:[%s914_s0] sm:$0x3]  ;;  %286 = vmatpush1.msra.mxu1 %v259_v14  ;;  %v114_v23 = vld [vmem:[%s911_s5 + $0x48] sm:$0xff]  ;;  %v111_v40 = vld [vmem:[%s911_s5 + $0x30] sm:$0xff] }
   0x6   :  { %489 = vmatpush3.msra.mxu0 %v118_v5  ;;  %v40_v18 = vrot.slane %v35_v10, %v603_v7  ;;  %v48_v19 = vrot.slane %v43_v11, %v603_v7  ;;  %v53_v20 = vmul.f32 1024.0, %v52_v12  ;;  %v255_v21 = vld [vmem:[%s913_s7 + $0x1c0] sm:$0xff]  ;;  %287 = vmatprep.subr.mxu1 %v256_v17  ;;  %v248_v29 = vld [vmem:[%s913_s7 + $0x188] sm:$0xff]  ;;  %v108_v55 = vld [vmem:[%s911_s5 + $0x18] sm:$0xff] }
   0x7   :  { %490 = vmatprep.subr.mxu0 %v531_v1  ;;  %v33_v24 = vld [vmem:[%s915_s1] sm:$0x3]  ;;  %288 = vmatpush1.msra.mxu1 %v255_v21  ;;  %v244_v34 = vld [vmem:[%s913_s7 + $0x168] sm:$0xff]  ;;  %v107_v60 = vld [vmem:[%s911_s5 + $0x10] sm:$0xff] }
   0x8   :  { %491 = vmatpush3.msra.mxu0 %v117_v6  ;;  %v251_v25 = vld [vmem:[%s913_s7 + $0x1a0] sm:$0xff]  ;;  %v652_v26 = vadd.f32 %v40_v18, %v32_v16  ;;  %v50_v27 = vmul.f32 %v48_v19, %v32_v16  ;;  %v58_v28 = vrot.slane %v53_v20, %v603_v7  ;;  %289 = vmatprep.subr.mxu1 %v252_v22  ;;  %v240_v39 = vld [vmem:[%s913_s7 + $0x148] sm:$0xff]  ;;  %v262_v14 = vld [vmem:[%s913_s7 + $0x1f8] sm:$0xff] }
   0x9   :  { %492 = vmatprep.subr.mxu0 %v531_v1  ;;  %v113_v30 = vld [vmem:[%s911_s5 + $0x40] sm:$0xff]  ;;  %290 = vmatpush1.msra.mxu1 %v251_v25  ;;  %v236_v44 = vld [vmem:[%s913_s7 + $0x128] sm:$0xff] }
   0xa   :  { %493 = vmatpush3.msra.mxu0 %v116_v8  ;;  %v247_v31 = vld [vmem:[%s913_s7 + $0x180] sm:$0xff]  ;;  %v51_v32 = vadd.f32 %v50_v27, %v33_v24  ;;  %v62_v33 = vsel %vm61_vm1, %v652_v26, 0.0  ;;  %291 = vmatprep.subr.mxu1 %v248_v29  ;;  %v110_v45 = vld [vmem:[%s911_s5 + $0x28] sm:$0xff]  ;;  %v90_v25 = vmul.f32 0.0009765625, %v652_v26  ;;  %v261_v26 = vld [vmem:[%s913_s7 + $0x1f0] sm:$0xff] }
   0xb   :  { %494 = vmatprep.subr.mxu0 %v531_v1  ;;  %v63_v36 = vrot.slane %v62_v33, 4  ;;  %v243_v37 = vld [vmem:[%s913_s7 + $0x160] sm:$0xff]  ;;  %292 = vmatpush1.msra.mxu1 %v247_v31  ;;  %v232_v49 = vld [vmem:[%s913_s7 + $0x108] sm:$0xff] }
   0xc   :  { %495 = vmatpush3.msra.mxu0 %v115_v15  ;;  %v60_v38 = vadd.f32 %v58_v28, %v51_v32  ;;  %293 = vmatprep.subr.mxu1 %v244_v34  ;;  %v239_v42 = vld [vmem:[%s913_s7 + $0x140] sm:$0xff]  ;;  %v228_v54 = vld [vmem:[%s913_s7 + $0xe8] sm:$0xff] }
   0xd   :  { %496 = vmatprep.subr.mxu0 %v531_v1  ;;  %v64_v41 = vadd.f32 %v63_v36, %v62_v33  ;;  %294 = vmatpush1.msra.mxu1 %v243_v37  ;;  %v235_v48 = vld [vmem:[%s913_s7 + $0x120] sm:$0xff]  ;;  %v224_v59 = vld [vmem:[%s913_s7 + $0xc8] sm:$0xff]  ;;  %v258_v36 = vld [vmem:[%s913_s7 + $0x1d8] sm:$0xff] }
   0xe   :  { %497 = vmatpush3.msra.mxu0 %v114_v23  ;;  %v71_v43 = vsel %vm61_vm1, %v60_v38, 0.0  ;;  %295 = vmatprep.subr.mxu1 %v240_v39  ;;  %v109_v50 = vld [vmem:[%s911_s5 + $0x20] sm:$0xff]  ;;  %v220_v0 = vld [vmem:[%s913_s7 + $0xa8] sm:$0xff]  ;;  %v254_v37 = vld [vmem:[%s913_s7 + $0x1b8] sm:$0xff] }
   0xf   :  { %498 = vmatprep.subr.mxu0 %v531_v1  ;;  %v65_v46 = vrot.slane %v64_v41, 2  ;;  %v72_v47 = vrot.slane %v71_v43, 4  ;;  %296 = vmatpush1.msra.mxu1 %v239_v42  ;;  %v231_v53 = vld [vmem:[%s913_s7 + $0x100] sm:$0xff]  ;;  %v106_v2 = vld [vmem:[%s911_s5 + $0x8] sm:$0xff]  ;;  %v253_v38 = vld [vmem:[%s913_s7 + $0x1b0] sm:$0xff] }
  0x10   :  { %499 = vmatpush3.msra.mxu0 %v113_v30  ;;  %297 = vmatprep.subr.mxu1 %v236_v44  ;;  %v227_v58 = vld [vmem:[%s913_s7 + $0xe0] sm:$0xff]  ;;  %v216_v8 = vld [vmem:[%s913_s7 + $0x88] sm:$0xff]  ;;  %v250_v39 = vld [vmem:[%s913_s7 + $0x198] sm:$0xff] }
  0x11   :  { %500 = vmatprep.subr.mxu0 %v531_v1  ;;  %v66_v51 = vadd.f32 %v65_v46, %v64_v41  ;;  %v73_v52 = vadd.f32 %v72_v47, %v71_v43  ;;  %298 = vmatpush1.msra.mxu1 %v235_v48  ;;  %v223_v63 = vld [vmem:[%s913_s7 + $0xc0] sm:$0xff]  ;;  %v212_v15 = vld [vmem:[%s913_s7 + $0x68] sm:$0xff]  ;;  %v245_v41 = vld [vmem:[%s913_s7 + $0x170] sm:$0xff] }
  0x12   :  { %501 = vmatpush3.msra.mxu0 %v112_v35  ;;  %299 = vmatprep.subr.mxu1 %v232_v49  ;;  %v219_v6 = vld [vmem:[%s913_s7 + $0xa0] sm:$0xff]  ;;  %v208_v18 = vld [vmem:[%s913_s7 + $0x48] sm:$0xff]  ;;  %v242_v42 = vld [vmem:[%s913_s7 + $0x158] sm:$0xff] }
  0x13   :  { %502 = vmatprep.subr.mxu0 %v531_v1  ;;  %v67_v56 = vrot.slane %v66_v51, 1  ;;  %v74_v57 = vrot.slane %v73_v52, 2  ;;  %300 = vmatpush1.msra.mxu1 %v231_v53  ;;  %v105_v10 = vld [vmem:[%s911_s5] sm:$0xff]  ;;  %v241_v43 = vld [vmem:[%s913_s7 + $0x150] sm:$0xff]  ;;  %v238_v44 = vld [vmem:[%s913_s7 + $0x138] sm:$0xff] }
  0x14   :  { %503 = vmatpush3.msra.mxu0 %v111_v40  ;;  %301 = vmatprep.subr.mxu1 %v228_v54  ;;  %v215_v13 = vld [vmem:[%s913_s7 + $0x80] sm:$0xff]  ;;  %v249_v40 = vld [vmem:[%s913_s7 + $0x190] sm:$0xff]  ;;  %v234_v46 = vld [vmem:[%s913_s7 + $0x118] sm:$0xff] }
  0x15   :  { %504 = vmatprep.subr.mxu0 %v531_v1  ;;  %v68_v61 = vadd.f32 %v67_v56, %v66_v51  ;;  %v75_v62 = vadd.f32 %v74_v57, %v73_v52  ;;  %302 = vmatpush1.msra.mxu1 %v227_v58  ;;  %v211_v17 = vld [vmem:[%s913_s7 + $0x60] sm:$0xff]  ;;  %v233_v47 = vld [vmem:[%s913_s7 + $0x110] sm:$0xff]  ;;  %v230_v48 = vld [vmem:[%s913_s7 + $0xf8] sm:$0xff] }
  0x16   :  { %505 = vmatpush3.msra.mxu0 %v110_v45  ;;  %303 = vmatprep.subr.mxu1 %v224_v59  ;;  %v82_v22 = vld [vmem:[%s916_s3] sm:$0x1]  ;;  %v237_v45 = vld [vmem:[%s913_s7 + $0x130] sm:$0xff]  ;;  %v222_v52 = vld [vmem:[%s913_s7 + $0xb8] sm:$0xff] }
  0x17   :  { %506 = vmatprep.subr.mxu0 %v531_v1  ;;  %v70_v3 = vmul.f32 0.00048828125, %v68_v61  ;;  %v76_v5 = vrot.slane %v75_v62, 1  ;;  %304 = vmatpush1.msra.mxu1 %v223_v63  ;;  %v86_v27 = vld [vmem:[%s917_s4] sm:$0x1]  ;;  %v229_v49 = vld [vmem:[%s913_s7 + $0xf0] sm:$0xff]  ;;  %v218_v54 = vld [vmem:[%s913_s7 + $0x98] sm:$0xff] }
  0x18   :  { %507 = vmatpush3.msra.mxu0 %v109_v50  ;;  %305 = vmatprep.subr.mxu1 %v220_v0  ;;  %v226_v50 = vld [vmem:[%s913_s7 + $0xd8] sm:$0xff]  ;;  %v225_v51 = vld [vmem:[%s913_s7 + $0xd0] sm:$0xff]  ;;  %v207_v59 = vld [vmem:[%s913_s7 + $0x40] sm:$0xff] }
  0x19   :  { %508 = vmatprep.subr.mxu0 %v531_v1  ;;  %v77_v11 = vadd.f32 %v76_v5, %v75_v62  ;;  %v79_v12 = vmul.f32 %v70_v3, %v70_v3  ;;  %306 = vmatpush1.msra.mxu1 %v219_v6  ;;  %v221_v53 = vld [vmem:[%s913_s7 + $0xb0] sm:$0xff]  ;;  %v214_v56 = vld [vmem:[%s913_s7 + $0x78] sm:$0xff]  ;;  %v204_v61 = vld [vmem:[%s913_s7 + $0x28] sm:$0xff] }
  0x1a   :  { %509 = vmatpush3.msra.mxu0 %v108_v55  ;;  %307 = vmatprep.subr.mxu1 %v216_v8  ;;  %v217_v55 = vld [vmem:[%s913_s7 + $0x90] sm:$0xff]  ;;  %v210_v58 = vld [vmem:[%s913_s7 + $0x58] sm:$0xff]  ;;  %v203_v63 = vld [vmem:[%s913_s7 + $0x20] sm:$0xff] }
  0x1b   :  { %510 = vmatprep.subr.mxu0 %v531_v1  ;;  %v78_v16 = vmul.f32 0.00048828125, %v77_v11  ;;  %308 = vmatpush1.msra.mxu1 %v215_v13  ;;  %v213_v57 = vld [vmem:[%s913_s7 + $0x70] sm:$0xff]  ;;  %v206_v62 = vld [vmem:[%s913_s7 + $0x38] sm:$0xff]  ;;  %v199_v5 = vld [vmem:[%s913_s7] sm:$0xff] }
  0x1c   :  { %511 = vmatpush3.msra.mxu0 %v107_v60  ;;  %309 = vmatprep.subr.mxu1 %v212_v15  ;;  %v209_v60 = vld [vmem:[%s913_s7 + $0x50] sm:$0xff]  ;;  %v463_v8 = vld [vmem:[%s918_s6] ss:$0 sm:$0xff] }
  0x1d   :  { %512 = vmatprep.subr.mxu0 %v531_v1  ;;  %v80_v19 = vsub.f32 %v78_v16, %v79_v12  ;;  %310 = vmatpush1.msra.mxu1 %v211_v17  ;;  %v205_v0 = vld [vmem:[%s913_s7 + $0x30] sm:$0xff]  ;;  %v263_v15 = vld [vmem:[%s919_s8] sm:$0xf]  ;;  %v271_v16 = vsub.s32 1, %v591_v4  ;;  %v279_v17 = vsub.s32 3, %v591_v4 }
  0x1e   :  { %513 = vmatpush3.msra.mxu0 %v106_v2  ;;  %311 = vmatprep.subr.mxu1 %v208_v18  ;;  %v200_v2 = vld [vmem:[%s913_s7 + $0x8] sm:$0xff]  ;;  %v201_v6 = vld [vmem:[%s913_s7 + $0x10] sm:$0xff]  ;;  %v268_v18 = vrot.slane %v263_v15, %v603_v7 }
  0x1f   :  { %514 = vmatprep.subr.mxu0 %v531_v1  ;;  %v81_v20 = vmax.f32 %v80_v19, 0.0  ;;  %312 = vmatpush1.msra.mxu1 %v207_v59 }
  0x20   :  { %515 = vmatpush3.msra.mxu0 %v105_v10  ;;  %313 = vmatprep.subr.mxu1 %v204_v61 }
  0x21   :  { %356 = vmatprep.subr.mxu0 %v262_v14  ;;  %v83_v21 = vadd.f32 1e-05, %v81_v20  ;;  %314 = vmatpush1.msra.mxu1 %v203_v63  ;;  %v275_v14 = vsub.s32 2, %v591_v4  ;;  %v272_v20 = vrot.slane %v263_v15, %v271_v16 }
  0x22   :  { %315 = vmatprep.subr.mxu1 %v200_v2 }
  0x23   :  { %521 = vrsqrt.f32 %v83_v21  ;;  %316 = vmatpush1.msra.mxu1 %v199_v5  ;;  %v276_v19 = vrot.slane %v263_v15, %v275_v14  ;;  %v280_v21 = vrot.slane %v263_v15, %v279_v17 }
  0x30   :  { %v522_v23 = vpop.eup %521 }
  0x31   :  { %v85_v24 = vmul.f32 %v522_v23, %v82_v22 }
  0x33   :  { %v87_v28 = vmul.f32 %v85_v24, %v70_v3  ;;  %v769_v29 = vrot.slane %v85_v24, %v603_v7  ;;  %v438_v30 = vmul.f32 %v85_v24, %v612_v9  ;;  %v257_v9 = vld [vmem:[%s913_s7 + $0x1d0] sm:$0xff]  ;;  %v202_v3 = vld [vmem:[%s913_s7 + $0x18] sm:$0xff] }
  0x35   :  { %v88_v31 = vsub.f32 %v86_v27, %v87_v28  ;;  %v97_v32 = vmul.f32 %v769_v29, %v90_v25 }
  0x37   :  { %v102_v33 = vrot.slane %v88_v31, %v603_v7  ;;  %v774_v34 = vadd.f32 %v438_v30, %v88_v31 }
  0x39   :  { %v104_v35 = vadd.f32 %v102_v33, %v97_v32  ;;  %v446_v4 = vrot.slane %v774_v34, %v603_v7 }
  0x3b   :  { %517 = vmatmul.mubr.f32.vlgmr.msra.gmra.mxu0 %v104_v35 }
  0x3c   :  { %357 = vmatpush1.msra.mxu0 %v261_v26  ;;  %420 = vmatprep.mubr.f32.mxu0 %v531_v1  ;;  %v246_v1 = vld [vmem:[%s913_s7 + $0x178] sm:$0xff] }
  0x3d   :  { %358 = vmatprep.subr.mxu0 %v258_v36 }
  0x3e   :  { %359 = vmatpush1.msra.mxu0 %v257_v9 }
  0x3f   :  { %360 = vmatprep.subr.mxu0 %v254_v37 }
  0x40   :  { %361 = vmatpush1.msra.mxu0 %v253_v38 }
  0x41   :  { %362 = vmatprep.subr.mxu0 %v250_v39 }
  0x42   :  { %363 = vmatpush1.msra.mxu0 %v249_v40 }
  0x43   :  { %364 = vmatprep.subr.mxu0 %v246_v1 }
  0x44   :  { %365 = vmatpush1.msra.mxu0 %v245_v41 }
  0x45   :  { %366 = vmatprep.subr.mxu0 %v242_v42 }
  0x46   :  { %367 = vmatpush1.msra.mxu0 %v241_v43 }
  0x47   :  { %368 = vmatprep.subr.mxu0 %v238_v44 }
  0x48   :  { %369 = vmatpush1.msra.mxu0 %v237_v45 }
  0x49   :  { %370 = vmatprep.subr.mxu0 %v234_v46 }
  0x4a   :  { %371 = vmatpush1.msra.mxu0 %v233_v47 }
  0x4b   :  { %372 = vmatprep.subr.mxu0 %v230_v48 }
  0x4c   :  { %373 = vmatpush1.msra.mxu0 %v229_v49 }
  0x4d   :  { %374 = vmatprep.subr.mxu0 %v226_v50 }
  0x4e   :  { %375 = vmatpush1.msra.mxu0 %v225_v51 }
  0x4f   :  { %376 = vmatprep.subr.mxu0 %v222_v52 }
  0x50   :  { %377 = vmatpush1.msra.mxu0 %v221_v53 }
  0x51   :  { %378 = vmatprep.subr.mxu0 %v218_v54 }
  0x52   :  { %379 = vmatpush1.msra.mxu0 %v217_v55 }
  0x53   :  { %380 = vmatprep.subr.mxu0 %v214_v56 }
  0x54   :  { %381 = vmatpush1.msra.mxu0 %v213_v57 }
  0x55   :  { %382 = vmatprep.subr.mxu0 %v210_v58 }
  0x56   :  { %383 = vmatpush1.msra.mxu0 %v209_v60 }
  0x57   :  { %384 = vmatprep.subr.mxu0 %v206_v62 }
  0x58   :  { %385 = vmatpush1.msra.mxu0 %v205_v0 }
  0x59   :  { %386 = vmatprep.subr.mxu0 %v202_v3 }
  0x5a   :  { %387 = vmatpush1.msra.mxu0 %v201_v6 }
  0xfb   :  { %v194_v10 = vpop.f32.mrf.mxu0 }
  0xfc   :  { %v195_v11 = vadd.f32 %v463_v8, %v194_v10 }
  0xfd   :  { %v518_v12 = vpop.f32.mrf.mxu0 }
  0xfe   :  { %v198_v13 = vmax.f32 %v195_v11, 0.0 }
 0x100   :  { %350 = vmatmul.mubr.f32.vlgmr.msra.gmra.mxu1 %v198_v13  ;;  %421 = vmatmul.mubr.f32.vlgmr.msra.gmra.mxu0 %v198_v13 }
 0x1c0   :  { %v351_v22 = vpop.f32.mrf.mxu1  ;;  %v422_v23 = vpop.f32.mrf.mxu0 }
 0x1c1   :  { %v352_v24 = vadd.f32 %v351_v22, %v268_v18  ;;  %v423_v25 = vadd.f32 %v422_v23, %v276_v19 }
 0x1c2   :  { %v353_v27 = vpop.f32.mrf.mxu1  ;;  %v424_v28 = vpop.f32.mrf.mxu0 }
 0x1c3   :  { %v427_v30 = vmul.f32 0.5, %v352_v24  ;;  %v429_v31 = vmul.f32 0.5, %v423_v25  ;;  %v354_v32 = vadd.f32 %v353_v27, %v272_v20  ;;  %v425_v33 = vadd.f32 %v424_v28, %v280_v21 }
 0x1c5   :  { %523 = vtanh.f32 %v427_v30  ;;  %v428_v35 = vmul.f32 0.5, %v354_v32  ;;  %v430_v26 = vmul.f32 0.5, %v425_v33 }
 0x1c6   :  { %525 = vtanh.f32 %v429_v31 }
 0x1c7   :  { %527 = vtanh.f32 %v428_v35 }
 0x1c8   :  { %529 = vtanh.f32 %v430_v26 }
 0x1d2   :  { %v524_v36 = vpop.eup %523 }
 0x1d3   :  { %v526_v9 = vpop.eup %525  ;;  %v435_v37 = vadd.f32 1.0, %v524_v36 }
 0x1d4   :  { %v528_v38 = vpop.eup %527  ;;  %v436_v39 = vmul.f32 0.5, %v526_v9 }
 0x1d5   :  { %v530_v40 = vpop.eup %529  ;;  %v440_v1 = vmul.f32 %v435_v37, %v769_v29  ;;  %v448_v41 = vmul.f32 %v446_v4, %v435_v37  ;;  %v452_v42 = vmul.f32 %v528_v38, %v769_v29  ;;  %v455_v43 = vmul.f32 %v528_v38, %v446_v4 }
 0x1d6   :  { %v437_v44 = vmul.f32 0.5, %v530_v40 }
 0x1d7   :  { %441 = vst [vmem:[%s920_s9] sm:$0x3] %v440_v1  ;;  %v449_v45 = vadd.f32 %v448_v41, %v436_v39  ;;  %465 = vst [vmem:[%s920_s9 + $0x4] sm:$0x3] %v452_v42 }
 0x1d8   :  { %v456_v7 = vadd.f32 %v455_v43, %v437_v44 }
 0x1d9   :  { %464 = vst [vmem:[%s920_s9 + $0x2] sm:$0x3] %v449_v45 }
 0x1da   :  { %466 = vst [vmem:[%s920_s9 + $0x6] sm:$0x3] %v456_v7 }

// kernel: up_conv_pallas.5
= control target key start
LH: loop header
LB: loop body
LE: loop exit
PB: predicated region body
PF: predicated region fallthrough
CT: control target
= control target key end

     0   :  { %s1144_s12 = smov 0   ;;  %s1146_s13 = smov 0   ;;  %s1471_s0 = inlined_call_operand.vmem [shape: f32[2,256,36], index: 0, kind: input, shape index: {}]   ;;  %s1472_s1 = inlined_call_operand.vmem [shape: f32[36,32], index: 1, kind: input, shape index: {}]   ;;  %s1473_s2 = inlined_call_operand.vmem [shape: f32[2,4,32], index: 2, kind: input, shape index: {}]   ;;  %s1474_s3 = inlined_call_operand.vmem [shape: f32[2,256,32], index: 3, kind: output, shape index: {}]  }
   0x1   :  { %s1148_s14 = smov 0  }
   0x2 LB: > { %s32_s15 = sadd.s32 1, %s1118_s13  ;;  %p928_p0 = scmp.ge.s32.totalorder %s1122_s14, 1  ;;  %s1122_s14 = sphi %s1148_s14, %s13_s14   ;;  %s1118_s13 = sphi %s1146_s13, %s1476_s13   ;;  %s1114_s12 = sphi %s1144_s12, %s1475_s12  }
   0x3   : > { %p34_p1 = scmp.ge.s32.totalorder %s32_s15, 2  ;;  %p180_p2 = scmp.lt.s32.totalorder %s1122_s14, 3 }
   0x5   : > { %s1478_s15 = smov (%p34_p1, %s32_s15), 0  ;;  %p181_p3 = pnand %p928_p0, %p180_p2 }
   0x6   : > { %p220_p4 = scmp.lt.s32.totalorder (!%p181_p3), %s1114_s12, 1 }
   0x7   : > { %184 = sbr.rel (%p181_p3) target bundleno = 263 (0x107), region = 32 }
   0xc   : > { %v282_v0 = vld [vmem:[%s1472_s1 + $0x20] sm:$0xf]  ;;  %vm380_vm0 = vcmask 1043456   ;;  %v281_v1 = vld [vmem:[%s1472_s1 + $0x18] sm:$0xff]  ;;  %v280_v2 = vld [vmem:[%s1472_s1 + $0x10] sm:$0xff]  ;;  %s1480_s12 = smov (!%p220_p4, %s1114_s12), 1  ;;  %v610_v37 = vlaneseq }
   0xd   : > { %1008 = vmatprep.subr.msk.mxu0 %vm380_vm0, %v282_v0  ;;  %1066 = vmatprep.subr.msk.mxu1 %vm380_vm0, %v282_v0  ;;  %v279_v3 = vld [vmem:[%s1472_s1 + $0x8] sm:$0xff]  ;;  %s969_s24 = sshll.u32 %s1480_s12, 8  ;;  %v278_v4 = vld [vmem:[%s1472_s1] sm:$0xff]  ;;  %vm283_vm1 = vcmask 293888   ;;  %s931_s30 = sshll.u32 %s1480_s12, 2  ;;  %vm786_vm2 = vcmask 261120  }
   0xe   : > { %1009 = vmatpush3.msk.msra.mxu0 %vm380_vm0, %v282_v0  ;;  %1071 = vmatpush3.msk.msra.mxu1 %vm380_vm0, %v282_v0  ;;  %s1182_s27 = scalar_lea.vmem %s1471_s0, %s969_s24  ;;  %v611_v38 = vshrl.u32 %v610_v37, 7  ;;  %s233_s6 = scalar_lea.vmem %s1473_s2, %s931_s30 }
   0xf   : > { %1010 = vmatprep.subr.mxu0 %v281_v1  ;;  %1067 = vmatprep.subr.mxu1 %v281_v1  ;;  %v246_v5 = vld [vmem:[%s1182_s27] sm:$0xff]  ;;  %v247_v7 = vld [vmem:[%s1182_s27 + $0x8] sm:$0xff]  ;;  %v248_v9 = vld [vmem:[%s1182_s27 + $0x10] sm:$0xff]  ;;  %s1276_s9 = scalar_lea.vmem %s1474_s3, %s969_s24 }
  0x10   : > { %1011 = vmatpush3.msra.mxu0 %v281_v1  ;;  %1072 = vmatpush3.msra.mxu1 %v281_v1  ;;  %v262_v6 = vld [vmem:[%s1182_s27 + $0x80] sm:$0xff]  ;;  %v263_v8 = vld [vmem:[%s1182_s27 + $0x88] sm:$0xff]  ;;  %v264_v10 = vld [vmem:[%s1182_s27 + $0x90] sm:$0xff]  ;;  %v612_v39 = vsub.s32 0, %v611_v38  ;;  %v684_v40 = vsub.s32 2, %v611_v38  ;;  %v648_v42 = vsub.s32 1, %v611_v38 }
  0x11   : > { %1012 = vmatprep.subr.mxu0 %v280_v2  ;;  %1068 = vmatprep.subr.mxu1 %v280_v2  ;;  %v249_v11 = vld [vmem:[%s1182_s27 + $0x18] sm:$0xff]  ;;  %v250_v13 = vld [vmem:[%s1182_s27 + $0x20] sm:$0xff]  ;;  %v251_v15 = vld [vmem:[%s1182_s27 + $0x28] sm:$0xff]  ;;  %v720_v43 = vsub.s32 3, %v611_v38 }
  0x12   : > { %1013 = vmatpush3.msra.mxu0 %v280_v2  ;;  %1073 = vmatpush3.msra.mxu1 %v280_v2  ;;  %v265_v12 = vld [vmem:[%s1182_s27 + $0x98] sm:$0xff]  ;;  %v266_v14 = vld [vmem:[%s1182_s27 + $0xa0] sm:$0xff]  ;;  %v267_v16 = vld [vmem:[%s1182_s27 + $0xa8] sm:$0xff] }
  0x13   : > { %1014 = vmatprep.subr.mxu0 %v279_v3  ;;  %1069 = vmatprep.subr.mxu1 %v279_v3  ;;  %v252_v17 = vld [vmem:[%s1182_s27 + $0x30] sm:$0xff]  ;;  %v253_v19 = vld [vmem:[%s1182_s27 + $0x38] sm:$0xff]  ;;  %v254_v21 = vld [vmem:[%s1182_s27 + $0x40] sm:$0xff] }
  0x14   : > { %1015 = vmatpush3.msra.mxu0 %v279_v3  ;;  %1074 = vmatpush3.msra.mxu1 %v279_v3  ;;  %v268_v18 = vld [vmem:[%s1182_s27 + $0xb0] sm:$0xff]  ;;  %v269_v20 = vld [vmem:[%s1182_s27 + $0xb8] sm:$0xff]  ;;  %v270_v22 = vld [vmem:[%s1182_s27 + $0xc0] sm:$0xff] }
  0x15   : > { %1016 = vmatprep.subr.mxu0 %v278_v4  ;;  %1070 = vmatprep.subr.mxu1 %v278_v4  ;;  %v255_v23 = vld [vmem:[%s1182_s27 + $0x48] sm:$0xff]  ;;  %v256_v25 = vld [vmem:[%s1182_s27 + $0x50] sm:$0xff]  ;;  %v257_v27 = vld [vmem:[%s1182_s27 + $0x58] sm:$0xff] }
  0x16   : > { %1017 = vmatpush3.msra.mxu0 %v278_v4  ;;  %1075 = vmatpush3.msra.mxu1 %v278_v4  ;;  %v271_v24 = vld [vmem:[%s1182_s27 + $0xc8] sm:$0xff]  ;;  %v272_v26 = vld [vmem:[%s1182_s27 + $0xd0] sm:$0xff]  ;;  %v273_v28 = vld [vmem:[%s1182_s27 + $0xd8] sm:$0xff] }
  0x17   : > { %1018 = vmatprep.mubr.msk.f32.mxu0 %vm283_vm1, %v246_v5  ;;  %1042 = vmatprep.mubr.msk.f32.mxu1 %vm283_vm1, %v262_v6  ;;  %v258_v29 = vld [vmem:[%s1182_s27 + $0x60] sm:$0xff]  ;;  %v259_v31 = vld [vmem:[%s1182_s27 + $0x68] sm:$0xff]  ;;  %v260_v33 = vld [vmem:[%s1182_s27 + $0x70] sm:$0xff] }
  0x18   : > { %1019 = vmatmul.mubr.msk.f32.vlgmr.msra.gmra.mxu0 %vm283_vm1, %v247_v7  ;;  %1043 = vmatmul.mubr.msk.f32.vlgmr.msra.gmra.mxu1 %vm283_vm1, %v263_v8  ;;  %v274_v30 = vld [vmem:[%s1182_s27 + $0xe0] sm:$0xff]  ;;  %v275_v32 = vld [vmem:[%s1182_s27 + $0xe8] sm:$0xff]  ;;  %v276_v34 = vld [vmem:[%s1182_s27 + $0xf0] sm:$0xff] }
  0x19   : > { %1021 = vmatprep.mubr.msk.f32.mxu0 %vm283_vm1, %v248_v9  ;;  %1045 = vmatprep.mubr.msk.f32.mxu1 %vm283_vm1, %v264_v10  ;;  %v261_v35 = vld [vmem:[%s1182_s27 + $0x78] sm:$0xff]  ;;  %v609_v41 = vld [vmem:[%s233_s6] sm:$0xf] }
  0x1a   : > { %v277_v36 = vld [vmem:[%s1182_s27 + $0xf8] sm:$0xff]  ;;  %v1255_v44 = vrot.slane %v609_v41, %v612_v39  ;;  %v1257_v45 = vrot.slane %v609_v41, %v684_v40  ;;  %v1259_v46 = vrot.slane %v609_v41, %v648_v42  ;;  %v1261_v47 = vrot.slane %v609_v41, %v720_v43 }
  0x1c   : > { %1022 = vmatmul.mubr.msk.f32.gmra.mxu0 %vm283_vm1, %v249_v11  ;;  %1046 = vmatmul.mubr.msk.f32.gmra.mxu1 %vm283_vm1, %v265_v12 }
  0x1d   : > { %1024 = vmatprep.mubr.msk.f32.mxu0 %vm283_vm1, %v250_v13  ;;  %1048 = vmatprep.mubr.msk.f32.mxu1 %vm283_vm1, %v266_v14 }
  0x20   : > { %1025 = vmatmul.mubr.msk.f32.gmra.mxu0 %vm283_vm1, %v251_v15  ;;  %1049 = vmatmul.mubr.msk.f32.gmra.mxu1 %vm283_vm1, %v267_v16 }
  0x21   : > { %1027 = vmatprep.mubr.msk.f32.mxu0 %vm283_vm1, %v252_v17  ;;  %1051 = vmatprep.mubr.msk.f32.mxu1 %vm283_vm1, %v268_v18 }
  0x24   : > { %1028 = vmatmul.mubr.msk.f32.gmra.mxu0 %vm283_vm1, %v253_v19  ;;  %1052 = vmatmul.mubr.msk.f32.gmra.mxu1 %vm283_vm1, %v269_v20 }
  0x25   : > { %1030 = vmatprep.mubr.msk.f32.mxu0 %vm283_vm1, %v254_v21  ;;  %1054 = vmatprep.mubr.msk.f32.mxu1 %vm283_vm1, %v270_v22 }
  0x28   : > { %1031 = vmatmul.mubr.msk.f32.gmra.mxu0 %vm283_vm1, %v255_v23  ;;  %1055 = vmatmul.mubr.msk.f32.gmra.mxu1 %vm283_vm1, %v271_v24 }
  0x29   : > { %1033 = vmatprep.mubr.msk.f32.mxu0 %vm283_vm1, %v256_v25  ;;  %1057 = vmatprep.mubr.msk.f32.mxu1 %vm283_vm1, %v272_v26 }
  0x2c   : > { %1034 = vmatmul.mubr.msk.f32.gmra.mxu0 %vm283_vm1, %v257_v27  ;;  %1058 = vmatmul.mubr.msk.f32.gmra.mxu1 %vm283_vm1, %v273_v28 }
  0x2d   : > { %1036 = vmatprep.mubr.msk.f32.mxu0 %vm283_vm1, %v258_v29  ;;  %1060 = vmatprep.mubr.msk.f32.mxu1 %vm283_vm1, %v274_v30 }
  0x30   : > { %1037 = vmatmul.mubr.msk.f32.gmra.mxu0 %vm283_vm1, %v259_v31  ;;  %1061 = vmatmul.mubr.msk.f32.gmra.mxu1 %vm283_vm1, %v275_v32 }
  0x31   : > { %1039 = vmatprep.mubr.msk.f32.mxu0 %vm283_vm1, %v260_v33  ;;  %1063 = vmatprep.mubr.msk.f32.mxu1 %vm283_vm1, %v276_v34 }
  0x34   : > { %1040 = vmatmul.mubr.msk.f32.gmra.mxu0 %vm283_vm1, %v261_v35  ;;  %1064 = vmatmul.mubr.msk.f32.gmra.mxu1 %vm283_vm1, %v277_v36 }
  0xd8   : > { %v1020_v48 = vpop.f32.mrf.mxu0  ;;  %v1044_v49 = vpop.f32.mrf.mxu1 }
  0xd9   : > { %v615_v50 = vmul.f32 %v1020_v48, %v1255_v44  ;;  %v687_v51 = vmul.f32 %v1020_v48, %v1257_v45  ;;  %v631_v52 = vmul.f32 %v1044_v49, %v1255_v44  ;;  %v703_v53 = vmul.f32 %v1044_v49, %v1257_v45 }
  0xda   : > { %v450_v54 = vpop.f32.mrf.mxu0  ;;  %v530_v55 = vpop.f32.mrf.mxu1 }
  0xdb   : > { %v651_v56 = vadd.f32 %v1259_v46, %v615_v50  ;;  %v723_v57 = vadd.f32 %v1261_v47, %v687_v51  ;;  %v667_v58 = vadd.f32 %v1259_v46, %v631_v52  ;;  %v739_v59 = vadd.f32 %v1261_v47, %v703_v53 }
  0xdc   : > { %v614_v60 = vmul.f32 %v1255_v44, %v450_v54  ;;  %v686_v61 = vmul.f32 %v1257_v45, %v450_v54  ;;  %v630_v62 = vmul.f32 %v1255_v44, %v530_v55  ;;  %v702_v63 = vmul.f32 %v1257_v45, %v530_v55  ;;  %v1023_v0 = vpop.f32.mrf.mxu0  ;;  %v1047_v1 = vpop.f32.mrf.mxu1 }
  0xdd   : > { %v755_v2 = vmax.f32 %v651_v56, %v723_v57  ;;  %v771_v3 = vmax.f32 %v667_v58, %v739_v59  ;;  %v617_v4 = vmul.f32 %v1023_v0, %v1255_v44  ;;  %v689_v5 = vmul.f32 %v1023_v0, %v1257_v45 }
  0xde   : > { %v650_v6 = vadd.f32 %v1259_v46, %v614_v60  ;;  %v722_v7 = vadd.f32 %v1261_v47, %v686_v61  ;;  %v666_v8 = vadd.f32 %v1259_v46, %v630_v62  ;;  %v738_v9 = vadd.f32 %v1261_v47, %v702_v63  ;;  %v460_v10 = vpop.f32.mrf.mxu0  ;;  %v540_v11 = vpop.f32.mrf.mxu1 }
  0xdf   : > { %788 = vst.msk [vmem:[%s1276_s9 + $0x8] sm:$0xff] %vm786_vm2, %v755_v2  ;;  %804 = vst.msk [vmem:[%s1276_s9 + $0x88] sm:$0xff] %vm786_vm2, %v771_v3  ;;  %v653_v12 = vadd.f32 %v1259_v46, %v617_v4  ;;  %v725_v13 = vadd.f32 %v1261_v47, %v689_v5  ;;  %v633_v14 = vmul.f32 %v1047_v1, %v1255_v44 }
  0xe0   : > { %v705_v15 = vmul.f32 %v1047_v1, %v1257_v45  ;;  %v754_v16 = vmax.f32 %v650_v6, %v722_v7  ;;  %v770_v17 = vmax.f32 %v666_v8, %v738_v9  ;;  %v616_v18 = vmul.f32 %v1255_v44, %v460_v10  ;;  %v1026_v20 = vpop.f32.mrf.mxu0  ;;  %v1050_v21 = vpop.f32.mrf.mxu1 }
  0xe1   : > { %v688_v19 = vmul.f32 %v1257_v45, %v460_v10  ;;  %v757_v22 = vmax.f32 %v653_v12, %v725_v13  ;;  %v669_v23 = vadd.f32 %v1259_v46, %v633_v14  ;;  %v632_v25 = vmul.f32 %v1255_v44, %v540_v11 }
  0xe2   : > { %v741_v24 = vadd.f32 %v1261_v47, %v705_v15  ;;  %787 = vst.msk [vmem:[%s1276_s9] sm:$0xff] %vm786_vm2, %v754_v16  ;;  %803 = vst.msk [vmem:[%s1276_s9 + $0x80] sm:$0xff] %vm786_vm2, %v770_v17  ;;  %v652_v26 = vadd.f32 %v1259_v46, %v616_v18  ;;  %v704_v28 = vmul.f32 %v1257_v45, %v540_v11  ;;  %v470_v30 = vpop.f32.mrf.mxu0  ;;  %v550_v31 = vpop.f32.mrf.mxu1 }
  0xe3   : > { %v724_v27 = vadd.f32 %v1261_v47, %v688_v19  ;;  %v619_v29 = vmul.f32 %v1026_v20, %v1255_v44  ;;  %790 = vst.msk [vmem:[%s1276_s9 + $0x18] sm:$0xff] %vm786_vm2, %v757_v22  ;;  %v668_v33 = vadd.f32 %v1259_v46, %v632_v25  ;;  %v691_v34 = vmul.f32 %v1026_v20, %v1257_v45 }
  0xe4   : > { %v773_v32 = vmax.f32 %v669_v23, %v741_v24  ;;  %v635_v35 = vmul.f32 %v1050_v21, %v1255_v44  ;;  %v740_v37 = vadd.f32 %v1261_v47, %v704_v28  ;;  %v707_v39 = vmul.f32 %v1050_v21, %v1257_v45  ;;  %v1029_v40 = vpop.f32.mrf.mxu0  ;;  %v1053_v41 = vpop.f32.mrf.mxu1 }
  0xe5   : > { %v756_v36 = vmax.f32 %v652_v26, %v724_v27  ;;  %v655_v38 = vadd.f32 %v1259_v46, %v619_v29  ;;  %v727_v42 = vadd.f32 %v1261_v47, %v691_v34  ;;  %v618_v48 = vmul.f32 %v1255_v44, %v470_v30 }
  0xe6   : > { %806 = vst.msk [vmem:[%s1276_s9 + $0x98] sm:$0xff] %vm786_vm2, %v773_v32  ;;  %v671_v43 = vadd.f32 %v1259_v46, %v635_v35  ;;  %v690_v49 = vmul.f32 %v1257_v45, %v470_v30  ;;  %v772_v50 = vmax.f32 %v668_v33, %v740_v37  ;;  %v743_v51 = vadd.f32 %v1261_v47, %v707_v39  ;;  %v480_v54 = vpop.f32.mrf.mxu0  ;;  %v560_v55 = vpop.f32.mrf.mxu1 }
  0xe7   : > { %789 = vst.msk [vmem:[%s1276_s9 + $0x10] sm:$0xff] %vm786_vm2, %v756_v36  ;;  %v634_v52 = vmul.f32 %v1255_v44, %v550_v31  ;;  %v706_v53 = vmul.f32 %v1257_v45, %v550_v31  ;;  %v759_v56 = vmax.f32 %v655_v38, %v727_v42  ;;  %v654_v57 = vadd.f32 %v1259_v46, %v618_v48 }
  0xe8   : > { %v726_v58 = vadd.f32 %v1261_v47, %v690_v49  ;;  %v621_v59 = vmul.f32 %v1029_v40, %v1255_v44  ;;  %805 = vst.msk [vmem:[%s1276_s9 + $0x90] sm:$0xff] %vm786_vm2, %v772_v50  ;;  %v775_v60 = vmax.f32 %v671_v43, %v743_v51  ;;  %v693_v63 = vmul.f32 %v1029_v40, %v1257_v45  ;;  %v1032_v0 = vpop.f32.mrf.mxu0  ;;  %v1056_v1 = vpop.f32.mrf.mxu1 }
  0xe9   : > { %v670_v61 = vadd.f32 %v1259_v46, %v634_v52  ;;  %v742_v62 = vadd.f32 %v1261_v47, %v706_v53  ;;  %792 = vst.msk [vmem:[%s1276_s9 + $0x28] sm:$0xff] %vm786_vm2, %v759_v56  ;;  %v637_v4 = vmul.f32 %v1053_v41, %v1255_v44  ;;  %v709_v5 = vmul.f32 %v1053_v41, %v1257_v45 }
  0xea   : > { %v758_v2 = vmax.f32 %v654_v57, %v726_v58  ;;  %v657_v3 = vadd.f32 %v1259_v46, %v621_v59  ;;  %808 = vst.msk [vmem:[%s1276_s9 + $0xa8] sm:$0xff] %vm786_vm2, %v775_v60  ;;  %v729_v7 = vadd.f32 %v1261_v47, %v693_v63  ;;  %v620_v8 = vmul.f32 %v1255_v44, %v480_v54  ;;  %v490_v10 = vpop.f32.mrf.mxu0  ;;  %v570_v11 = vpop.f32.mrf.mxu1 }
  0xeb   : > { %v774_v6 = vmax.f32 %v670_v61, %v742_v62  ;;  %v692_v9 = vmul.f32 %v1257_v45, %v480_v54  ;;  %v673_v12 = vadd.f32 %v1259_v46, %v637_v4  ;;  %v745_v13 = vadd.f32 %v1261_v47, %v709_v5 }
  0xec   : > { %791 = vst.msk [vmem:[%s1276_s9 + $0x20] sm:$0xff] %vm786_vm2, %v758_v2  ;;  %v636_v14 = vmul.f32 %v1255_v44, %v560_v55  ;;  %v708_v15 = vmul.f32 %v1257_v45, %v560_v55  ;;  %v761_v16 = vmax.f32 %v657_v3, %v729_v7  ;;  %v656_v17 = vadd.f32 %v1259_v46, %v620_v8  ;;  %v1035_v20 = vpop.f32.mrf.mxu0  ;;  %v1059_v21 = vpop.f32.mrf.mxu1 }
  0xed   : > { %807 = vst.msk [vmem:[%s1276_s9 + $0xa0] sm:$0xff] %vm786_vm2, %v774_v6  ;;  %v728_v18 = vadd.f32 %v1261_v47, %v692_v9  ;;  %v623_v19 = vmul.f32 %v1032_v0, %v1255_v44  ;;  %v777_v22 = vmax.f32 %v673_v12, %v745_v13  ;;  %v695_v25 = vmul.f32 %v1032_v0, %v1257_v45 }
  0xee   : > { %v672_v23 = vadd.f32 %v1259_v46, %v636_v14  ;;  %v744_v24 = vadd.f32 %v1261_v47, %v708_v15  ;;  %794 = vst.msk [vmem:[%s1276_s9 + $0x38] sm:$0xff] %vm786_vm2, %v761_v16  ;;  %v639_v28 = vmul.f32 %v1056_v1, %v1255_v44  ;;  %v711_v29 = vmul.f32 %v1056_v1, %v1257_v45  ;;  %v500_v30 = vpop.f32.mrf.mxu0  ;;  %v580_v31 = vpop.f32.mrf.mxu1 }
  0xef   : > { %v760_v26 = vmax.f32 %v656_v17, %v728_v18  ;;  %v659_v27 = vadd.f32 %v1259_v46, %v623_v19  ;;  %810 = vst.msk [vmem:[%s1276_s9 + $0xb8] sm:$0xff] %vm786_vm2, %v777_v22  ;;  %v731_v33 = vadd.f32 %v1261_v47, %v695_v25  ;;  %v622_v34 = vmul.f32 %v1255_v44, %v490_v10 }
  0xf0   : > { %v776_v32 = vmax.f32 %v672_v23, %v744_v24  ;;  %v694_v35 = vmul.f32 %v1257_v45, %v490_v10  ;;  %v675_v36 = vadd.f32 %v1259_v46, %v639_v28  ;;  %v747_v37 = vadd.f32 %v1261_v47, %v711_v29  ;;  %v1038_v40 = vpop.f32.mrf.mxu0  ;;  %v1062_v41 = vpop.f32.mrf.mxu1 }
  0xf1   : > { %793 = vst.msk [vmem:[%s1276_s9 + $0x30] sm:$0xff] %vm786_vm2, %v760_v26  ;;  %v638_v38 = vmul.f32 %v1255_v44, %v570_v11  ;;  %v710_v39 = vmul.f32 %v1257_v45, %v570_v11  ;;  %v763_v42 = vmax.f32 %v659_v27, %v731_v33  ;;  %v658_v43 = vadd.f32 %v1259_v46, %v622_v34 }
  0xf2   : > { %809 = vst.msk [vmem:[%s1276_s9 + $0xb0] sm:$0xff] %vm786_vm2, %v776_v32  ;;  %v730_v48 = vadd.f32 %v1261_v47, %v694_v35  ;;  %v625_v49 = vmul.f32 %v1035_v20, %v1255_v44  ;;  %v779_v50 = vmax.f32 %v675_v36, %v747_v37  ;;  %v697_v53 = vmul.f32 %v1035_v20, %v1257_v45  ;;  %v510_v58 = vpop.f32.mrf.mxu0  ;;  %v590_v63 = vpop.f32.mrf.mxu1 }
  0xf3   : > { %v674_v51 = vadd.f32 %v1259_v46, %v638_v38  ;;  %v746_v52 = vadd.f32 %v1261_v47, %v710_v39  ;;  %796 = vst.msk [vmem:[%s1276_s9 + $0x48] sm:$0xff] %vm786_vm2, %v763_v42  ;;  %v641_v56 = vmul.f32 %v1059_v21, %v1255_v44  ;;  %v713_v57 = vmul.f32 %v1059_v21, %v1257_v45 }
  0xf4   : > { %v762_v54 = vmax.f32 %v658_v43, %v730_v48  ;;  %v661_v55 = vadd.f32 %v1259_v46, %v625_v49  ;;  %812 = vst.msk [vmem:[%s1276_s9 + $0xc8] sm:$0xff] %vm786_vm2, %v779_v50  ;;  %v733_v60 = vadd.f32 %v1261_v47, %v697_v53  ;;  %v624_v61 = vmul.f32 %v1255_v44, %v500_v30  ;;  %v1041_v12 = vpop.f32.mrf.mxu0  ;;  %v1065_v17 = vpop.f32.mrf.mxu1 }
  0xf5   : > { %v778_v59 = vmax.f32 %v674_v51, %v746_v52  ;;  %v696_v62 = vmul.f32 %v1257_v45, %v500_v30  ;;  %v677_v0 = vadd.f32 %v1259_v46, %v641_v56  ;;  %v749_v1 = vadd.f32 %v1261_v47, %v713_v57 }
  0xf6   : > { %795 = vst.msk [vmem:[%s1276_s9 + $0x40] sm:$0xff] %vm786_vm2, %v762_v54  ;;  %v640_v2 = vmul.f32 %v1255_v44, %v580_v31  ;;  %v712_v3 = vmul.f32 %v1257_v45, %v580_v31  ;;  %v765_v4 = vmax.f32 %v661_v55, %v733_v60  ;;  %v660_v5 = vadd.f32 %v1259_v46, %v624_v61  ;;  %v520_v30 = vpop.f32.mrf.mxu0  ;;  %v600_v35 = vpop.f32.mrf.mxu1 }
  0xf7   : > { %811 = vst.msk [vmem:[%s1276_s9 + $0xc0] sm:$0xff] %vm786_vm2, %v778_v59  ;;  %v732_v6 = vadd.f32 %v1261_v47, %v696_v62  ;;  %v627_v7 = vmul.f32 %v1038_v40, %v1255_v44  ;;  %v781_v8 = vmax.f32 %v677_v0, %v749_v1  ;;  %v699_v11 = vmul.f32 %v1038_v40, %v1257_v45 }
  0xf8   : > { %v676_v9 = vadd.f32 %v1259_v46, %v640_v2  ;;  %v748_v10 = vadd.f32 %v1261_v47, %v712_v3  ;;  %798 = vst.msk [vmem:[%s1276_s9 + $0x58] sm:$0xff] %vm786_vm2, %v765_v4  ;;  %v643_v15 = vmul.f32 %v1062_v41, %v1255_v44  ;;  %v715_v16 = vmul.f32 %v1062_v41, %v1257_v45 }
  0xf9   : > { %v764_v13 = vmax.f32 %v660_v5, %v732_v6  ;;  %v663_v14 = vadd.f32 %v1259_v46, %v627_v7  ;;  %814 = vst.msk [vmem:[%s1276_s9 + $0xd8] sm:$0xff] %vm786_vm2, %v781_v8  ;;  %v735_v19 = vadd.f32 %v1261_v47, %v699_v11  ;;  %v626_v20 = vmul.f32 %v1255_v44, %v510_v58 }
  0xfa   : > { %v780_v18 = vmax.f32 %v676_v9, %v748_v10  ;;  %v698_v21 = vmul.f32 %v1257_v45, %v510_v58  ;;  %v679_v22 = vadd.f32 %v1259_v46, %v643_v15  ;;  %v751_v23 = vadd.f32 %v1261_v47, %v715_v16 }
  0xfb   : > { %797 = vst.msk [vmem:[%s1276_s9 + $0x50] sm:$0xff] %vm786_vm2, %v764_v13  ;;  %v642_v24 = vmul.f32 %v1255_v44, %v590_v63  ;;  %v714_v25 = vmul.f32 %v1257_v45, %v590_v63  ;;  %v767_v26 = vmax.f32 %v663_v14, %v735_v19  ;;  %v662_v27 = vadd.f32 %v1259_v46, %v626_v20 }
  0xfc   : > { %813 = vst.msk [vmem:[%s1276_s9 + $0xd0] sm:$0xff] %vm786_vm2, %v780_v18  ;;  %v734_v28 = vadd.f32 %v1261_v47, %v698_v21  ;;  %v629_v29 = vmul.f32 %v1041_v12, %v1255_v44  ;;  %v783_v31 = vmax.f32 %v679_v22, %v751_v23  ;;  %v701_v34 = vmul.f32 %v1041_v12, %v1257_v45 }
  0xfd   : > { %v678_v32 = vadd.f32 %v1259_v46, %v642_v24  ;;  %v750_v33 = vadd.f32 %v1261_v47, %v714_v25  ;;  %800 = vst.msk [vmem:[%s1276_s9 + $0x68] sm:$0xff] %vm786_vm2, %v767_v26  ;;  %v645_v38 = vmul.f32 %v1065_v17, %v1255_v44  ;;  %v717_v39 = vmul.f32 %v1065_v17, %v1257_v45 }
  0xfe   : > { %v766_v36 = vmax.f32 %v662_v27, %v734_v28  ;;  %v665_v37 = vadd.f32 %v1259_v46, %v629_v29  ;;  %816 = vst.msk [vmem:[%s1276_s9 + $0xe8] sm:$0xff] %vm786_vm2, %v783_v31  ;;  %v737_v41 = vadd.f32 %v1261_v47, %v701_v34  ;;  %v628_v42 = vmul.f32 %v1255_v44, %v520_v30 }
  0xff   : > { %v782_v40 = vmax.f32 %v678_v32, %v750_v33  ;;  %v700_v43 = vmul.f32 %v1257_v45, %v520_v30  ;;  %v681_v48 = vadd.f32 %v1259_v46, %v645_v38  ;;  %v753_v49 = vadd.f32 %v1261_v47, %v717_v39 }
 0x100   : > { %799 = vst.msk [vmem:[%s1276_s9 + $0x60] sm:$0xff] %vm786_vm2, %v766_v36  ;;  %v644_v50 = vmul.f32 %v1255_v44, %v600_v35  ;;  %v716_v51 = vmul.f32 %v1257_v45, %v600_v35  ;;  %v769_v52 = vmax.f32 %v665_v37, %v737_v41  ;;  %v664_v53 = vadd.f32 %v1259_v46, %v628_v42 }
 0x101   : > { %815 = vst.msk [vmem:[%s1276_s9 + $0xe0] sm:$0xff] %vm786_vm2, %v782_v40  ;;  %v736_v54 = vadd.f32 %v1261_v47, %v700_v43  ;;  %v785_v55 = vmax.f32 %v681_v48, %v753_v49 }
 0x102   : > { %v680_v56 = vadd.f32 %v1259_v46, %v644_v50  ;;  %v752_v57 = vadd.f32 %v1261_v47, %v716_v51  ;;  %802 = vst.msk [vmem:[%s1276_s9 + $0x78] sm:$0xff] %vm786_vm2, %v769_v52 }
 0x103   : > { %v768_v58 = vmax.f32 %v664_v53, %v736_v54  ;;  %818 = vst.msk [vmem:[%s1276_s9 + $0xf8] sm:$0xff] %vm786_vm2, %v785_v55 }
 0x104   : > { %v784_v44 = vmax.f32 %v680_v56, %v752_v57 }
 0x105   : > { %801 = vst.msk [vmem:[%s1276_s9 + $0x70] sm:$0xff] %vm786_vm2, %v768_v58 }
 0x106   : > { %817 = vst.msk [vmem:[%s1276_s9 + $0xf0] sm:$0xff] %vm786_vm2, %v784_v44 }
 0x107 PF: > { %s13_s14 = sadd.s32 1, %s1122_s14   ;;  %s1475_s12 = smov %s1118_s13 }
 0x108   : > { %p10_p5 = scmp.ge.s32.totalorder %s13_s14, 4   ;;  %s1476_s13 = smov %s1478_s15 }
 0x10a   :  { %12 = sbr.rel (!%p10_p5) target bundleno = 2 (0x2), region = 65 }

</bundles_post_ra>
